<compile_context>
chip_gen: v7x
topology: tpu7x:2x2x1
jax: 0.10.0
libtpu: 0.0.40
codegen_flags: <defaults>
</compile_context>

<pallas_src>
import jax
import jax.numpy as jnp
from jax.experimental import pallas as pl
from jax.experimental.pallas import tpu as pltpu


# ---------------------------------------------------------------------------
# Fused kernel: GCN (all B*T graphs) + GRU over time + FC head
# ---------------------------------------------------------------------------
def _tgcn_fused_kernel(x_ref, a_ref, ws_ref, wn_ref, bg_ref,
                       wi_ref, wh_ref, bi_ref, bhn_ref,
                       wfc_ref, bfc_ref, o_ref):
    R = x_ref.shape[0]               # B*N rows
    H = wh_ref.shape[0]              # hidden size
    T = ws_ref.shape[1] // H         # timesteps

    # ---- GCN: mean-aggregator GraphSAGE for all B*T graphs at once ----
    x = x_ref[...]                                                      # (R, T*F)
    agg = jnp.dot(a_ref[...], x, preferred_element_type=jnp.float32)    # (R, T*F)
    hg = jnp.maximum(
        jnp.dot(x, ws_ref[...], preferred_element_type=jnp.float32)
        + jnp.dot(agg, wn_ref[...], preferred_element_type=jnp.float32)
        + bg_ref[...], 0.0)                                             # (R, T*H)

    # ---- GRU over time: hoisted weights / biases / broadcasts ----
    w_i = wi_ref[...]                                  # (H, 3H)  [W_ir|W_iz|W_in]
    w_h = wh_ref[...]                                  # (H, 3H)  [W_hr|W_hz|W_hn]
    b_i = jnp.broadcast_to(bi_ref[...], (R, 3 * H))    # b_ir+b_hr | b_iz+b_hz | b_in
    b_hn = jnp.broadcast_to(bhn_ref[...], (R, H))      # b_hn

    h = jnp.zeros((R, H), jnp.float32)
    # Static Python loop (T == 8): all lane slices stay static, and per-step
    # values (gi/gh) are recomputed each step so they are not live across
    # iterations (bounded live ranges without dynamic slicing).
    for t in range(T):
        x_t = hg[:, t * H:(t + 1) * H]                                    # (R, H)
        gi = jnp.dot(x_t, w_i, preferred_element_type=jnp.float32) + b_i  # off critical path
        gh = jnp.dot(h, w_h, preferred_element_type=jnp.float32)          # critical path
        r = jax.nn.sigmoid(gi[:, :H] + gh[:, :H])
        z = jax.nn.sigmoid(gi[:, H:2 * H] + gh[:, H:2 * H])
        n = jnp.tanh(gi[:, 2 * H:] + r * (gh[:, 2 * H:] + b_hn))
        h = (1.0 - z) * n + z * h

    # ---- FC head, written once ----
    o_ref[...] = (jnp.dot(h, wfc_ref[...], preferred_element_type=jnp.float32)
                  + bfc_ref[...])


def tgcn_fused(x2d, packed):
    R, TF = x2d.shape
    TH = packed["w_self_big"].shape[1]
    H = packed["w_hh"].shape[0]
    T_out = packed["w_fc"].shape[1]

    def full(shape):
        return pl.BlockSpec(shape, lambda i, _s=shape: (0,) * len(_s))

    return pl.pallas_call(
        _tgcn_fused_kernel,
        out_shape=jax.ShapeDtypeStruct((R, T_out), jnp.float32),
        grid=(1,),
        in_specs=[
            full((R, TF)),          # x
            full((R, R)),           # block-diagonal adjacency
            full((TF, TH)),         # W_self (time-block-diagonal)
            full((TF, TH)),         # W_neigh (time-block-diagonal)
            full((1, TH)),          # GCN bias (tiled over T)
            full((H, 3 * H)),       # W_ih fused
            full((H, 3 * H)),       # W_hh fused
            full((1, 3 * H)),       # folded input biases
            full((1, H)),           # b_hn
            full((H, T_out)),       # FC weight
            full((1, T_out)),       # FC bias
        ],
        out_specs=full((R, T_out)),
        compiler_params=pltpu.CompilerParams(
            dimension_semantics=("arbitrary",)),
    )(x2d, packed["a_bd"], packed["w_self_big"], packed["w_neigh_big"],
      packed["b_gcn_big"], packed["w_ih"], packed["w_hh"], packed["b_i3"],
      packed["b_hn"], packed["w_fc"], packed["b_fc"])


# ---------------------------------------------------------------------------
# Parameter prepacking (done once, outside the per-forward hot path)
# ---------------------------------------------------------------------------
def prepack_params(params, *, batch_size, num_timesteps_input):
    T = num_timesteps_input
    H = params["w_self"].shape[1]
    eye_t = jnp.eye(T, dtype=jnp.float32)
    b_ih, b_hh = params["b_ih"], params["b_hh"]
    return {
        "a_bd": jnp.kron(jnp.eye(batch_size, dtype=jnp.float32), params["a_hat"]),
        "w_self_big": jnp.kron(eye_t, params["w_self"]),       # (T*F, T*H)
        "w_neigh_big": jnp.kron(eye_t, params["w_neigh"]),     # (T*F, T*H)
        "b_gcn_big": jnp.tile(params["b_gcn"], (1, T)),        # (1, T*H)
        "w_ih": params["w_ih"],                                # (H, 3H)
        "w_hh": params["w_hh"],                                # (H, 3H)
        "b_i3": jnp.concatenate(
            [b_ih[:, :H] + b_hh[:, :H],
             b_ih[:, H:2 * H] + b_hh[:, H:2 * H],
             b_ih[:, 2 * H:]], axis=-1),                       # (1, 3H)
        "b_hn": b_hh[:, 2 * H:],                               # (1, H)
        "w_fc": params["w_fc"],
        "b_fc": params["b_fc"],
    }


# ---------------------------------------------------------------------------
# TGCN forward
# ---------------------------------------------------------------------------
def tgcn_forward(X, g, packed):
    # TODO(synk): g['cent_n_id'] embedding lookup of the reference KRNN is not reproduced.
    B, N, T, F = X.shape
    x2d = X.reshape(B * N, T * F)            # rows = (b, n), cols = (t, f)
    out2 = tgcn_fused(x2d, packed)           # (B*N, T_out)
    return out2.reshape(B, N, out2.shape[-1])


def init_params(key, *, num_nodes, num_features, hidden_size, num_timesteps_output):
    ks = jax.random.split(key, 8)

    def u(k, shape, fan_in):
        bound = 1.0 / jnp.sqrt(jnp.float32(fan_in))
        return jax.random.uniform(k, shape, jnp.float32, -bound, bound)

    # ring adjacency (k=2 neighbors each side), row-normalized mean aggregator
    idx = jnp.arange(num_nodes)
    a = jnp.zeros((num_nodes, num_nodes), jnp.float32)
    for d in (1, 2):
        a = a.at[idx, (idx + d) % num_nodes].set(1.0)
        a = a.at[idx, (idx - d) % num_nodes].set(1.0)
    a_hat = a / jnp.sum(a, axis=1, keepdims=True)

    H, F, T_out = hidden_size, num_features, num_timesteps_output
    return {
        "a_hat": a_hat,
        "w_self": u(ks[0], (F, H), F),
        "w_neigh": u(ks[1], (F, H), F),
        "b_gcn": u(ks[2], (1, H), F),
        "w_ih": u(ks[3], (H, 3 * H), H),
        "w_hh": u(ks[4], (H, 3 * H), H),
        "b_ih": u(ks[5], (1, 3 * H), H),
        "b_hh": u(ks[6], (1, 3 * H), H),
        "w_fc": u(ks[7], (H, T_out), H),
        "b_fc": jnp.zeros((1, T_out), jnp.float32),
    }


if __name__ == "__main__":
    B, N, T_in, T_out = 2, 16, 8, 4
    F, H = 4, 32

    key = jax.random.PRNGKey(0)
    kx, kp = jax.random.split(key)
    X = jax.random.normal(kx, (B, N, T_in, F), jnp.float32)
    g = {"cent_n_id": jnp.arange(N, dtype=jnp.int32)}
    params = init_params(kp, num_nodes=N, num_features=F, hidden_size=H,
                         num_timesteps_output=T_out)
    packed = prepack_params(params, batch_size=B, num_timesteps_input=T_in)

    out = tgcn_forward(X, g, packed)
    out = jax.block_until_ready(out)
    assert out.shape == (B, N, T_out), out.shape
    assert jnp.all(jnp.isfinite(out))
    print("KERNEL_OK")
</pallas_src>

<mosaic_0001>
module attributes {stable_mosaic.version = 11 : i64} {
  func.func @_tgcn_fused_kernel(%arg0: i32, %arg1: memref<32x32xf32, #tpu.memory_space<vmem>>, %arg2: memref<32x32xf32, #tpu.memory_space<vmem>>, %arg3: memref<32x256xf32, #tpu.memory_space<vmem>>, %arg4: memref<32x256xf32, #tpu.memory_space<vmem>>, %arg5: memref<1x256xf32, #tpu.memory_space<vmem>>, %arg6: memref<32x96xf32, #tpu.memory_space<vmem>>, %arg7: memref<32x96xf32, #tpu.memory_space<vmem>>, %arg8: memref<1x96xf32, #tpu.memory_space<vmem>>, %arg9: memref<1x32xf32, #tpu.memory_space<vmem>>, %arg10: memref<32x4xf32, #tpu.memory_space<vmem>>, %arg11: memref<1x4xf32, #tpu.memory_space<vmem>>, %arg12: memref<32x4xf32, #tpu.memory_space<vmem>>) attributes {dimension_semantics = [#tpu.dimension_semantics<arbitrary>], iteration_bounds = array<i64: 1>, scalar_prefetch = 0 : i64, scratch_operands = 0 : i64, tpu.core_type = #tpu.core_type<tc>, window_params = [{pipeline_mode = #tpu.pipeline_mode<synchronous>, transform_indices = @transform_0, window_bounds = array<i64: 32, 32>}, {pipeline_mode = #tpu.pipeline_mode<synchronous>, transform_indices = @transform_1, window_bounds = array<i64: 32, 32>}, {pipeline_mode = #tpu.pipeline_mode<synchronous>, transform_indices = @transform_2, window_bounds = array<i64: 32, 256>}, {pipeline_mode = #tpu.pipeline_mode<synchronous>, transform_indices = @transform_3, window_bounds = array<i64: 32, 256>}, {pipeline_mode = #tpu.pipeline_mode<synchronous>, transform_indices = @transform_4, window_bounds = array<i64: 1, 256>}, {pipeline_mode = #tpu.pipeline_mode<synchronous>, transform_indices = @transform_5, window_bounds = array<i64: 32, 96>}, {pipeline_mode = #tpu.pipeline_mode<synchronous>, transform_indices = @transform_6, window_bounds = array<i64: 32, 96>}, {pipeline_mode = #tpu.pipeline_mode<synchronous>, transform_indices = @transform_7, window_bounds = array<i64: 1, 96>}, {pipeline_mode = #tpu.pipeline_mode<synchronous>, transform_indices = @transform_8, window_bounds = array<i64: 1, 32>}, {pipeline_mode = #tpu.pipeline_mode<synchronous>, transform_indices = @transform_9, window_bounds = array<i64: 32, 4>}, {pipeline_mode = #tpu.pipeline_mode<synchronous>, transform_indices = @transform_10, window_bounds = array<i64: 1, 4>}, {pipeline_mode = #tpu.pipeline_mode<synchronous>, transform_indices = @transform_11, window_bounds = array<i64: 32, 4>}]} {
    %c0 = arith.constant 0 : index
    %c0_0 = arith.constant 0 : index
    %0 = vector.load %arg1[%c0, %c0_0] : memref<32x32xf32, #tpu.memory_space<vmem>>, vector<32x32xf32>
    %c0_1 = arith.constant 0 : index
    %c0_2 = arith.constant 0 : index
    %1 = vector.load %arg2[%c0_1, %c0_2] : memref<32x32xf32, #tpu.memory_space<vmem>>, vector<32x32xf32>
    %cst = arith.constant dense<0.000000e+00> : vector<32x32xf32>
    %2 = tpu.matmul %1, %0, %cst {dimension_numbers = #tpu.dot_dimension_numbers<[1], [0], [0], [1], [0, 0, 1, 1], [], []>} : vector<32x32xf32>, vector<32x32xf32>, vector<32x32xf32> -> vector<32x32xf32>
    %c0_3 = arith.constant 0 : index
    %c0_4 = arith.constant 0 : index
    %3 = vector.load %arg3[%c0_3, %c0_4] : memref<32x256xf32, #tpu.memory_space<vmem>>, vector<32x256xf32>
    %cst_5 = arith.constant dense<0.000000e+00> : vector<32x256xf32>
    %4 = tpu.matmul %0, %3, %cst_5 {dimension_numbers = #tpu.dot_dimension_numbers<[1], [0], [0], [1], [0, 0, 1, 1], [], []>} : vector<32x32xf32>, vector<32x256xf32>, vector<32x256xf32> -> vector<32x256xf32>
    %c0_6 = arith.constant 0 : index
    %c0_7 = arith.constant 0 : index
    %5 = vector.load %arg4[%c0_6, %c0_7] : memref<32x256xf32, #tpu.memory_space<vmem>>, vector<32x256xf32>
    %cst_8 = arith.constant dense<0.000000e+00> : vector<32x256xf32>
    %6 = tpu.matmul %2, %5, %cst_8 {dimension_numbers = #tpu.dot_dimension_numbers<[1], [0], [0], [1], [0, 0, 1, 1], [], []>} : vector<32x32xf32>, vector<32x256xf32>, vector<32x256xf32> -> vector<32x256xf32>
    %7 = arith.addf %4, %6 : vector<32x256xf32>
    %c0_9 = arith.constant 0 : index
    %c0_10 = arith.constant 0 : index
    %8 = vector.load %arg5[%c0_9, %c0_10] : memref<1x256xf32, #tpu.memory_space<vmem>>, vector<1x256xf32>
    %9 = vector.broadcast %8 : vector<1x256xf32> to vector<32x256xf32>
    %10 = arith.addf %7, %9 : vector<32x256xf32>
    %cst_11 = arith.constant 0.000000e+00 : f32
    %11 = vector.broadcast %cst_11 : f32 to vector<32x256xf32>
    %12 = arith.maximumf %10, %11 : vector<32x256xf32>
    %c0_12 = arith.constant 0 : index
    %c0_13 = arith.constant 0 : index
    %13 = vector.load %arg6[%c0_12, %c0_13] : memref<32x96xf32, #tpu.memory_space<vmem>>, vector<32x96xf32>
    %c0_14 = arith.constant 0 : index
    %c0_15 = arith.constant 0 : index
    %14 = vector.load %arg7[%c0_14, %c0_15] : memref<32x96xf32, #tpu.memory_space<vmem>>, vector<32x96xf32>
    %c0_16 = arith.constant 0 : index
    %c0_17 = arith.constant 0 : index
    %15 = vector.load %arg8[%c0_16, %c0_17] : memref<1x96xf32, #tpu.memory_space<vmem>>, vector<1x96xf32>
    %16 = vector.shape_cast %15 : vector<1x96xf32> to vector<1x96xf32>
    %17 = vector.broadcast %16 : vector<1x96xf32> to vector<32x96xf32>
    %c0_18 = arith.constant 0 : index
    %c0_19 = arith.constant 0 : index
    %18 = vector.load %arg9[%c0_18, %c0_19] : memref<1x32xf32, #tpu.memory_space<vmem>>, vector<1x32xf32>
    %19 = vector.shape_cast %18 : vector<1x32xf32> to vector<1x32xf32>
    %20 = vector.broadcast %19 : vector<1x32xf32> to vector<32x32xf32>
    %cst_20 = arith.constant 0.000000e+00 : f32
    %21 = vector.broadcast %cst_20 : f32 to vector<32x32xf32>
    %22 = vector.extract_strided_slice %12 {offsets = [0, 0], sizes = [32, 32], strides = [1, 1]} : vector<32x256xf32> to vector<32x32xf32>
    %cst_21 = arith.constant dense<0.000000e+00> : vector<32x96xf32>
    %23 = tpu.matmul %22, %13, %cst_21 {dimension_numbers = #tpu.dot_dimension_numbers<[1], [0], [0], [1], [0, 0, 1, 1], [], []>} : vector<32x32xf32>, vector<32x96xf32>, vector<32x96xf32> -> vector<32x96xf32>
    %24 = arith.addf %23, %17 : vector<32x96xf32>
    %cst_22 = arith.constant dense<0.000000e+00> : vector<32x96xf32>
    %25 = tpu.matmul %21, %14, %cst_22 {dimension_numbers = #tpu.dot_dimension_numbers<[1], [0], [0], [1], [0, 0, 1, 1], [], []>} : vector<32x32xf32>, vector<32x96xf32>, vector<32x96xf32> -> vector<32x96xf32>
    %26 = vector.extract_strided_slice %24 {offsets = [0, 0], sizes = [32, 32], strides = [1, 1]} : vector<32x96xf32> to vector<32x32xf32>
    %27 = vector.extract_strided_slice %25 {offsets = [0, 0], sizes = [32, 32], strides = [1, 1]} : vector<32x96xf32> to vector<32x32xf32>
    %28 = arith.addf %26, %27 : vector<32x32xf32>
    %29 = arith.negf %28 : vector<32x32xf32>
    %30 = math.exp %29 : vector<32x32xf32>
    %cst_23 = arith.constant 1.000000e+00 : f32
    %31 = vector.broadcast %cst_23 : f32 to vector<32x32xf32>
    %32 = arith.addf %31, %30 : vector<32x32xf32>
    %33 = arith.divf %31, %32 : vector<32x32xf32>
    %34 = vector.extract_strided_slice %24 {offsets = [0, 32], sizes = [32, 32], strides = [1, 1]} : vector<32x96xf32> to vector<32x32xf32>
    %35 = vector.extract_strided_slice %25 {offsets = [0, 32], sizes = [32, 32], strides = [1, 1]} : vector<32x96xf32> to vector<32x32xf32>
    %36 = arith.addf %34, %35 : vector<32x32xf32>
    %37 = arith.negf %36 : vector<32x32xf32>
    %38 = math.exp %37 : vector<32x32xf32>
    %cst_24 = arith.constant 1.000000e+00 : f32
    %39 = vector.broadcast %cst_24 : f32 to vector<32x32xf32>
    %40 = arith.addf %39, %38 : vector<32x32xf32>
    %41 = arith.divf %39, %40 : vector<32x32xf32>
    %42 = vector.extract_strided_slice %24 {offsets = [0, 64], sizes = [32, 32], strides = [1, 1]} : vector<32x96xf32> to vector<32x32xf32>
    %43 = vector.extract_strided_slice %25 {offsets = [0, 64], sizes = [32, 32], strides = [1, 1]} : vector<32x96xf32> to vector<32x32xf32>
    %44 = arith.addf %43, %20 : vector<32x32xf32>
    %45 = arith.mulf %33, %44 : vector<32x32xf32>
    %46 = arith.addf %42, %45 : vector<32x32xf32>
    %47 = math.tanh %46 : vector<32x32xf32>
    %cst_25 = arith.constant 1.000000e+00 : f32
    %48 = vector.broadcast %cst_25 : f32 to vector<32x32xf32>
    %49 = arith.subf %48, %41 : vector<32x32xf32>
    %50 = arith.mulf %49, %47 : vector<32x32xf32>
    %51 = arith.mulf %41, %21 : vector<32x32xf32>
    %52 = arith.addf %50, %51 : vector<32x32xf32>
    %53 = vector.extract_strided_slice %12 {offsets = [0, 32], sizes = [32, 32], strides = [1, 1]} : vector<32x256xf32> to vector<32x32xf32>
    %cst_26 = arith.constant dense<0.000000e+00> : vector<32x96xf32>
    %54 = tpu.matmul %53, %13, %cst_26 {dimension_numbers = #tpu.dot_dimension_numbers<[1], [0], [0], [1], [0, 0, 1, 1], [], []>} : vector<32x32xf32>, vector<32x96xf32>, vector<32x96xf32> -> vector<32x96xf32>
    %55 = arith.addf %54, %17 : vector<32x96xf32>
    %cst_27 = arith.constant dense<0.000000e+00> : vector<32x96xf32>
    %56 = tpu.matmul %52, %14, %cst_27 {dimension_numbers = #tpu.dot_dimension_numbers<[1], [0], [0], [1], [0, 0, 1, 1], [], []>} : vector<32x32xf32>, vector<32x96xf32>, vector<32x96xf32> -> vector<32x96xf32>
    %57 = vector.extract_strided_slice %55 {offsets = [0, 0], sizes = [32, 32], strides = [1, 1]} : vector<32x96xf32> to vector<32x32xf32>
    %58 = vector.extract_strided_slice %56 {offsets = [0, 0], sizes = [32, 32], strides = [1, 1]} : vector<32x96xf32> to vector<32x32xf32>
    %59 = arith.addf %57, %58 : vector<32x32xf32>
    %60 = arith.negf %59 : vector<32x32xf32>
    %61 = math.exp %60 : vector<32x32xf32>
    %cst_28 = arith.constant 1.000000e+00 : f32
    %62 = vector.broadcast %cst_28 : f32 to vector<32x32xf32>
    %63 = arith.addf %62, %61 : vector<32x32xf32>
    %64 = arith.divf %62, %63 : vector<32x32xf32>
    %65 = vector.extract_strided_slice %55 {offsets = [0, 32], sizes = [32, 32], strides = [1, 1]} : vector<32x96xf32> to vector<32x32xf32>
    %66 = vector.extract_strided_slice %56 {offsets = [0, 32], sizes = [32, 32], strides = [1, 1]} : vector<32x96xf32> to vector<32x32xf32>
    %67 = arith.addf %65, %66 : vector<32x32xf32>
    %68 = arith.negf %67 : vector<32x32xf32>
    %69 = math.exp %68 : vector<32x32xf32>
    %cst_29 = arith.constant 1.000000e+00 : f32
    %70 = vector.broadcast %cst_29 : f32 to vector<32x32xf32>
    %71 = arith.addf %70, %69 : vector<32x32xf32>
    %72 = arith.divf %70, %71 : vector<32x32xf32>
    %73 = vector.extract_strided_slice %55 {offsets = [0, 64], sizes = [32, 32], strides = [1, 1]} : vector<32x96xf32> to vector<32x32xf32>
    %74 = vector.extract_strided_slice %56 {offsets = [0, 64], sizes = [32, 32], strides = [1, 1]} : vector<32x96xf32> to vector<32x32xf32>
    %75 = arith.addf %74, %20 : vector<32x32xf32>
    %76 = arith.mulf %64, %75 : vector<32x32xf32>
    %77 = arith.addf %73, %76 : vector<32x32xf32>
    %78 = math.tanh %77 : vector<32x32xf32>
    %cst_30 = arith.constant 1.000000e+00 : f32
    %79 = vector.broadcast %cst_30 : f32 to vector<32x32xf32>
    %80 = arith.subf %79, %72 : vector<32x32xf32>
    %81 = arith.mulf %80, %78 : vector<32x32xf32>
    %82 = arith.mulf %72, %52 : vector<32x32xf32>
    %83 = arith.addf %81, %82 : vector<32x32xf32>
    %84 = vector.extract_strided_slice %12 {offsets = [0, 64], sizes = [32, 32], strides = [1, 1]} : vector<32x256xf32> to vector<32x32xf32>
    %cst_31 = arith.constant dense<0.000000e+00> : vector<32x96xf32>
    %85 = tpu.matmul %84, %13, %cst_31 {dimension_numbers = #tpu.dot_dimension_numbers<[1], [0], [0], [1], [0, 0, 1, 1], [], []>} : vector<32x32xf32>, vector<32x96xf32>, vector<32x96xf32> -> vector<32x96xf32>
    %86 = arith.addf %85, %17 : vector<32x96xf32>
    %cst_32 = arith.constant dense<0.000000e+00> : vector<32x96xf32>
    %87 = tpu.matmul %83, %14, %cst_32 {dimension_numbers = #tpu.dot_dimension_numbers<[1], [0], [0], [1], [0, 0, 1, 1], [], []>} : vector<32x32xf32>, vector<32x96xf32>, vector<32x96xf32> -> vector<32x96xf32>
    %88 = vector.extract_strided_slice %86 {offsets = [0, 0], sizes = [32, 32], strides = [1, 1]} : vector<32x96xf32> to vector<32x32xf32>
    %89 = vector.extract_strided_slice %87 {offsets = [0, 0], sizes = [32, 32], strides = [1, 1]} : vector<32x96xf32> to vector<32x32xf32>
    %90 = arith.addf %88, %89 : vector<32x32xf32>
    %91 = arith.negf %90 : vector<32x32xf32>
    %92 = math.exp %91 : vector<32x32xf32>
    %cst_33 = arith.constant 1.000000e+00 : f32
    %93 = vector.broadcast %cst_33 : f32 to vector<32x32xf32>
    %94 = arith.addf %93, %92 : vector<32x32xf32>
    %95 = arith.divf %93, %94 : vector<32x32xf32>
    %96 = vector.extract_strided_slice %86 {offsets = [0, 32], sizes = [32, 32], strides = [1, 1]} : vector<32x96xf32> to vector<32x32xf32>
    %97 = vector.extract_strided_slice %87 {offsets = [0, 32], sizes = [32, 32], strides = [1, 1]} : vector<32x96xf32> to vector<32x32xf32>
    %98 = arith.addf %96, %97 : vector<32x32xf32>
    %99 = arith.negf %98 : vector<32x32xf32>
    %100 = math.exp %99 : vector<32x32xf32>
    %cst_34 = arith.constant 1.000000e+00 : f32
    %101 = vector.broadcast %cst_34 : f32 to vector<32x32xf32>
    %102 = arith.addf %101, %100 : vector<32x32xf32>
    %103 = arith.divf %101, %102 : vector<32x32xf32>
    %104 = vector.extract_strided_slice %86 {offsets = [0, 64], sizes = [32, 32], strides = [1, 1]} : vector<32x96xf32> to vector<32x32xf32>
    %105 = vector.extract_strided_slice %87 {offsets = [0, 64], sizes = [32, 32], strides = [1, 1]} : vector<32x96xf32> to vector<32x32xf32>
    %106 = arith.addf %105, %20 : vector<32x32xf32>
    %107 = arith.mulf %95, %106 : vector<32x32xf32>
    %108 = arith.addf %104, %107 : vector<32x32xf32>
    %109 = math.tanh %108 : vector<32x32xf32>
    %cst_35 = arith.constant 1.000000e+00 : f32
    %110 = vector.broadcast %cst_35 : f32 to vector<32x32xf32>
    %111 = arith.subf %110, %103 : vector<32x32xf32>
    %112 = arith.mulf %111, %109 : vector<32x32xf32>
    %113 = arith.mulf %103, %83 : vector<32x32xf32>
    %114 = arith.addf %112, %113 : vector<32x32xf32>
    %115 = vector.extract_strided_slice %12 {offsets = [0, 96], sizes = [32, 32], strides = [1, 1]} : vector<32x256xf32> to vector<32x32xf32>
    %cst_36 = arith.constant dense<0.000000e+00> : vector<32x96xf32>
    %116 = tpu.matmul %115, %13, %cst_36 {dimension_numbers = #tpu.dot_dimension_numbers<[1], [0], [0], [1], [0, 0, 1, 1], [], []>} : vector<32x32xf32>, vector<32x96xf32>, vector<32x96xf32> -> vector<32x96xf32>
    %117 = arith.addf %116, %17 : vector<32x96xf32>
    %cst_37 = arith.constant dense<0.000000e+00> : vector<32x96xf32>
    %118 = tpu.matmul %114, %14, %cst_37 {dimension_numbers = #tpu.dot_dimension_numbers<[1], [0], [0], [1], [0, 0, 1, 1], [], []>} : vector<32x32xf32>, vector<32x96xf32>, vector<32x96xf32> -> vector<32x96xf32>
    %119 = vector.extract_strided_slice %117 {offsets = [0, 0], sizes = [32, 32], strides = [1, 1]} : vector<32x96xf32> to vector<32x32xf32>
    %120 = vector.extract_strided_slice %118 {offsets = [0, 0], sizes = [32, 32], strides = [1, 1]} : vector<32x96xf32> to vector<32x32xf32>
    %121 = arith.addf %119, %120 : vector<32x32xf32>
    %122 = arith.negf %121 : vector<32x32xf32>
    %123 = math.exp %122 : vector<32x32xf32>
    %cst_38 = arith.constant 1.000000e+00 : f32
    %124 = vector.broadcast %cst_38 : f32 to vector<32x32xf32>
    %125 = arith.addf %124, %123 : vector<32x32xf32>
    %126 = arith.divf %124, %125 : vector<32x32xf32>
    %127 = vector.extract_strided_slice %117 {offsets = [0, 32], sizes = [32, 32], strides = [1, 1]} : vector<32x96xf32> to vector<32x32xf32>
    %128 = vector.extract_strided_slice %118 {offsets = [0, 32], sizes = [32, 32], strides = [1, 1]} : vector<32x96xf32> to vector<32x32xf32>
    %129 = arith.addf %127, %128 : vector<32x32xf32>
    %130 = arith.negf %129 : vector<32x32xf32>
    %131 = math.exp %130 : vector<32x32xf32>
    %cst_39 = arith.constant 1.000000e+00 : f32
    %132 = vector.broadcast %cst_39 : f32 to vector<32x32xf32>
    %133 = arith.addf %132, %131 : vector<32x32xf32>
    %134 = arith.divf %132, %133 : vector<32x32xf32>
    %135 = vector.extract_strided_slice %117 {offsets = [0, 64], sizes = [32, 32], strides = [1, 1]} : vector<32x96xf32> to vector<32x32xf32>
    %136 = vector.extract_strided_slice %118 {offsets = [0, 64], sizes = [32, 32], strides = [1, 1]} : vector<32x96xf32> to vector<32x32xf32>
    %137 = arith.addf %136, %20 : vector<32x32xf32>
    %138 = arith.mulf %126, %137 : vector<32x32xf32>
    %139 = arith.addf %135, %138 : vector<32x32xf32>
    %140 = math.tanh %139 : vector<32x32xf32>
    %cst_40 = arith.constant 1.000000e+00 : f32
    %141 = vector.broadcast %cst_40 : f32 to vector<32x32xf32>
    %142 = arith.subf %141, %134 : vector<32x32xf32>
    %143 = arith.mulf %142, %140 : vector<32x32xf32>
    %144 = arith.mulf %134, %114 : vector<32x32xf32>
    %145 = arith.addf %143, %144 : vector<32x32xf32>
    %146 = vector.extract_strided_slice %12 {offsets = [0, 128], sizes = [32, 32], strides = [1, 1]} : vector<32x256xf32> to vector<32x32xf32>
    %cst_41 = arith.constant dense<0.000000e+00> : vector<32x96xf32>
    %147 = tpu.matmul %146, %13, %cst_41 {dimension_numbers = #tpu.dot_dimension_numbers<[1], [0], [0], [1], [0, 0, 1, 1], [], []>} : vector<32x32xf32>, vector<32x96xf32>, vector<32x96xf32> -> vector<32x96xf32>
    %148 = arith.addf %147, %17 : vector<32x96xf32>
    %cst_42 = arith.constant dense<0.000000e+00> : vector<32x96xf32>
    %149 = tpu.matmul %145, %14, %cst_42 {dimension_numbers = #tpu.dot_dimension_numbers<[1], [0], [0], [1], [0, 0, 1, 1], [], []>} : vector<32x32xf32>, vector<32x96xf32>, vector<32x96xf32> -> vector<32x96xf32>
    %150 = vector.extract_strided_slice %148 {offsets = [0, 0], sizes = [32, 32], strides = [1, 1]} : vector<32x96xf32> to vector<32x32xf32>
    %151 = vector.extract_strided_slice %149 {offsets = [0, 0], sizes = [32, 32], strides = [1, 1]} : vector<32x96xf32> to vector<32x32xf32>
    %152 = arith.addf %150, %151 : vector<32x32xf32>
    %153 = arith.negf %152 : vector<32x32xf32>
    %154 = math.exp %153 : vector<32x32xf32>
    %cst_43 = arith.constant 1.000000e+00 : f32
    %155 = vector.broadcast %cst_43 : f32 to vector<32x32xf32>
    %156 = arith.addf %155, %154 : vector<32x32xf32>
    %157 = arith.divf %155, %156 : vector<32x32xf32>
    %158 = vector.extract_strided_slice %148 {offsets = [0, 32], sizes = [32, 32], strides = [1, 1]} : vector<32x96xf32> to vector<32x32xf32>
    %159 = vector.extract_strided_slice %149 {offsets = [0, 32], sizes = [32, 32], strides = [1, 1]} : vector<32x96xf32> to vector<32x32xf32>
    %160 = arith.addf %158, %159 : vector<32x32xf32>
    %161 = arith.negf %160 : vector<32x32xf32>
    %162 = math.exp %161 : vector<32x32xf32>
    %cst_44 = arith.constant 1.000000e+00 : f32
    %163 = vector.broadcast %cst_44 : f32 to vector<32x32xf32>
    %164 = arith.addf %163, %162 : vector<32x32xf32>
    %165 = arith.divf %163, %164 : vector<32x32xf32>
    %166 = vector.extract_strided_slice %148 {offsets = [0, 64], sizes = [32, 32], strides = [1, 1]} : vector<32x96xf32> to vector<32x32xf32>
    %167 = vector.extract_strided_slice %149 {offsets = [0, 64], sizes = [32, 32], strides = [1, 1]} : vector<32x96xf32> to vector<32x32xf32>
    %168 = arith.addf %167, %20 : vector<32x32xf32>
    %169 = arith.mulf %157, %168 : vector<32x32xf32>
    %170 = arith.addf %166, %169 : vector<32x32xf32>
    %171 = math.tanh %170 : vector<32x32xf32>
    %cst_45 = arith.constant 1.000000e+00 : f32
    %172 = vector.broadcast %cst_45 : f32 to vector<32x32xf32>
    %173 = arith.subf %172, %165 : vector<32x32xf32>
    %174 = arith.mulf %173, %171 : vector<32x32xf32>
    %175 = arith.mulf %165, %145 : vector<32x32xf32>
    %176 = arith.addf %174, %175 : vector<32x32xf32>
    %177 = vector.extract_strided_slice %12 {offsets = [0, 160], sizes = [32, 32], strides = [1, 1]} : vector<32x256xf32> to vector<32x32xf32>
    %cst_46 = arith.constant dense<0.000000e+00> : vector<32x96xf32>
    %178 = tpu.matmul %177, %13, %cst_46 {dimension_numbers = #tpu.dot_dimension_numbers<[1], [0], [0], [1], [0, 0, 1, 1], [], []>} : vector<32x32xf32>, vector<32x96xf32>, vector<32x96xf32> -> vector<32x96xf32>
    %179 = arith.addf %178, %17 : vector<32x96xf32>
    %cst_47 = arith.constant dense<0.000000e+00> : vector<32x96xf32>
    %180 = tpu.matmul %176, %14, %cst_47 {dimension_numbers = #tpu.dot_dimension_numbers<[1], [0], [0], [1], [0, 0, 1, 1], [], []>} : vector<32x32xf32>, vector<32x96xf32>, vector<32x96xf32> -> vector<32x96xf32>
    %181 = vector.extract_strided_slice %179 {offsets = [0, 0], sizes = [32, 32], strides = [1, 1]} : vector<32x96xf32> to vector<32x32xf32>
    %182 = vector.extract_strided_slice %180 {offsets = [0, 0], sizes = [32, 32], strides = [1, 1]} : vector<32x96xf32> to vector<32x32xf32>
    %183 = arith.addf %181, %182 : vector<32x32xf32>
    %184 = arith.negf %183 : vector<32x32xf32>
    %185 = math.exp %184 : vector<32x32xf32>
    %cst_48 = arith.constant 1.000000e+00 : f32
    %186 = vector.broadcast %cst_48 : f32 to vector<32x32xf32>
    %187 = arith.addf %186, %185 : vector<32x32xf32>
    %188 = arith.divf %186, %187 : vector<32x32xf32>
    %189 = vector.extract_strided_slice %179 {offsets = [0, 32], sizes = [32, 32], strides = [1, 1]} : vector<32x96xf32> to vector<32x32xf32>
    %190 = vector.extract_strided_slice %180 {offsets = [0, 32], sizes = [32, 32], strides = [1, 1]} : vector<32x96xf32> to vector<32x32xf32>
    %191 = arith.addf %189, %190 : vector<32x32xf32>
    %192 = arith.negf %191 : vector<32x32xf32>
    %193 = math.exp %192 : vector<32x32xf32>
    %cst_49 = arith.constant 1.000000e+00 : f32
    %194 = vector.broadcast %cst_49 : f32 to vector<32x32xf32>
    %195 = arith.addf %194, %193 : vector<32x32xf32>
    %196 = arith.divf %194, %195 : vector<32x32xf32>
    %197 = vector.extract_strided_slice %179 {offsets = [0, 64], sizes = [32, 32], strides = [1, 1]} : vector<32x96xf32> to vector<32x32xf32>
    %198 = vector.extract_strided_slice %180 {offsets = [0, 64], sizes = [32, 32], strides = [1, 1]} : vector<32x96xf32> to vector<32x32xf32>
    %199 = arith.addf %198, %20 : vector<32x32xf32>
    %200 = arith.mulf %188, %199 : vector<32x32xf32>
    %201 = arith.addf %197, %200 : vector<32x32xf32>
    %202 = math.tanh %201 : vector<32x32xf32>
    %cst_50 = arith.constant 1.000000e+00 : f32
    %203 = vector.broadcast %cst_50 : f32 to vector<32x32xf32>
    %204 = arith.subf %203, %196 : vector<32x32xf32>
    %205 = arith.mulf %204, %202 : vector<32x32xf32>
    %206 = arith.mulf %196, %176 : vector<32x32xf32>
    %207 = arith.addf %205, %206 : vector<32x32xf32>
    %208 = vector.extract_strided_slice %12 {offsets = [0, 192], sizes = [32, 32], strides = [1, 1]} : vector<32x256xf32> to vector<32x32xf32>
    %cst_51 = arith.constant dense<0.000000e+00> : vector<32x96xf32>
    %209 = tpu.matmul %208, %13, %cst_51 {dimension_numbers = #tpu.dot_dimension_numbers<[1], [0], [0], [1], [0, 0, 1, 1], [], []>} : vector<32x32xf32>, vector<32x96xf32>, vector<32x96xf32> -> vector<32x96xf32>
    %210 = arith.addf %209, %17 : vector<32x96xf32>
    %cst_52 = arith.constant dense<0.000000e+00> : vector<32x96xf32>
    %211 = tpu.matmul %207, %14, %cst_52 {dimension_numbers = #tpu.dot_dimension_numbers<[1], [0], [0], [1], [0, 0, 1, 1], [], []>} : vector<32x32xf32>, vector<32x96xf32>, vector<32x96xf32> -> vector<32x96xf32>
    %212 = vector.extract_strided_slice %210 {offsets = [0, 0], sizes = [32, 32], strides = [1, 1]} : vector<32x96xf32> to vector<32x32xf32>
    %213 = vector.extract_strided_slice %211 {offsets = [0, 0], sizes = [32, 32], strides = [1, 1]} : vector<32x96xf32> to vector<32x32xf32>
    %214 = arith.addf %212, %213 : vector<32x32xf32>
    %215 = arith.negf %214 : vector<32x32xf32>
    %216 = math.exp %215 : vector<32x32xf32>
    %cst_53 = arith.constant 1.000000e+00 : f32
    %217 = vector.broadcast %cst_53 : f32 to vector<32x32xf32>
    %218 = arith.addf %217, %216 : vector<32x32xf32>
    %219 = arith.divf %217, %218 : vector<32x32xf32>
    %220 = vector.extract_strided_slice %210 {offsets = [0, 32], sizes = [32, 32], strides = [1, 1]} : vector<32x96xf32> to vector<32x32xf32>
    %221 = vector.extract_strided_slice %211 {offsets = [0, 32], sizes = [32, 32], strides = [1, 1]} : vector<32x96xf32> to vector<32x32xf32>
    %222 = arith.addf %220, %221 : vector<32x32xf32>
    %223 = arith.negf %222 : vector<32x32xf32>
    %224 = math.exp %223 : vector<32x32xf32>
    %cst_54 = arith.constant 1.000000e+00 : f32
    %225 = vector.broadcast %cst_54 : f32 to vector<32x32xf32>
    %226 = arith.addf %225, %224 : vector<32x32xf32>
    %227 = arith.divf %225, %226 : vector<32x32xf32>
    %228 = vector.extract_strided_slice %210 {offsets = [0, 64], sizes = [32, 32], strides = [1, 1]} : vector<32x96xf32> to vector<32x32xf32>
    %229 = vector.extract_strided_slice %211 {offsets = [0, 64], sizes = [32, 32], strides = [1, 1]} : vector<32x96xf32> to vector<32x32xf32>
    %230 = arith.addf %229, %20 : vector<32x32xf32>
    %231 = arith.mulf %219, %230 : vector<32x32xf32>
    %232 = arith.addf %228, %231 : vector<32x32xf32>
    %233 = math.tanh %232 : vector<32x32xf32>
    %cst_55 = arith.constant 1.000000e+00 : f32
    %234 = vector.broadcast %cst_55 : f32 to vector<32x32xf32>
    %235 = arith.subf %234, %227 : vector<32x32xf32>
    %236 = arith.mulf %235, %233 : vector<32x32xf32>
    %237 = arith.mulf %227, %207 : vector<32x32xf32>
    %238 = arith.addf %236, %237 : vector<32x32xf32>
    %239 = vector.extract_strided_slice %12 {offsets = [0, 224], sizes = [32, 32], strides = [1, 1]} : vector<32x256xf32> to vector<32x32xf32>
    %cst_56 = arith.constant dense<0.000000e+00> : vector<32x96xf32>
    %240 = tpu.matmul %239, %13, %cst_56 {dimension_numbers = #tpu.dot_dimension_numbers<[1], [0], [0], [1], [0, 0, 1, 1], [], []>} : vector<32x32xf32>, vector<32x96xf32>, vector<32x96xf32> -> vector<32x96xf32>
    %241 = arith.addf %240, %17 : vector<32x96xf32>
    %cst_57 = arith.constant dense<0.000000e+00> : vector<32x96xf32>
    %242 = tpu.matmul %238, %14, %cst_57 {dimension_numbers = #tpu.dot_dimension_numbers<[1], [0], [0], [1], [0, 0, 1, 1], [], []>} : vector<32x32xf32>, vector<32x96xf32>, vector<32x96xf32> -> vector<32x96xf32>
    %243 = vector.extract_strided_slice %241 {offsets = [0, 0], sizes = [32, 32], strides = [1, 1]} : vector<32x96xf32> to vector<32x32xf32>
    %244 = vector.extract_strided_slice %242 {offsets = [0, 0], sizes = [32, 32], strides = [1, 1]} : vector<32x96xf32> to vector<32x32xf32>
    %245 = arith.addf %243, %244 : vector<32x32xf32>
    %246 = arith.negf %245 : vector<32x32xf32>
    %247 = math.exp %246 : vector<32x32xf32>
    %cst_58 = arith.constant 1.000000e+00 : f32
    %248 = vector.broadcast %cst_58 : f32 to vector<32x32xf32>
    %249 = arith.addf %248, %247 : vector<32x32xf32>
    %250 = arith.divf %248, %249 : vector<32x32xf32>
    %251 = vector.extract_strided_slice %241 {offsets = [0, 32], sizes = [32, 32], strides = [1, 1]} : vector<32x96xf32> to vector<32x32xf32>
    %252 = vector.extract_strided_slice %242 {offsets = [0, 32], sizes = [32, 32], strides = [1, 1]} : vector<32x96xf32> to vector<32x32xf32>
    %253 = arith.addf %251, %252 : vector<32x32xf32>
    %254 = arith.negf %253 : vector<32x32xf32>
    %255 = math.exp %254 : vector<32x32xf32>
    %cst_59 = arith.constant 1.000000e+00 : f32
    %256 = vector.broadcast %cst_59 : f32 to vector<32x32xf32>
    %257 = arith.addf %256, %255 : vector<32x32xf32>
    %258 = arith.divf %256, %257 : vector<32x32xf32>
    %259 = vector.extract_strided_slice %241 {offsets = [0, 64], sizes = [32, 32], strides = [1, 1]} : vector<32x96xf32> to vector<32x32xf32>
    %260 = vector.extract_strided_slice %242 {offsets = [0, 64], sizes = [32, 32], strides = [1, 1]} : vector<32x96xf32> to vector<32x32xf32>
    %261 = arith.addf %260, %20 : vector<32x32xf32>
    %262 = arith.mulf %250, %261 : vector<32x32xf32>
    %263 = arith.addf %259, %262 : vector<32x32xf32>
    %264 = math.tanh %263 : vector<32x32xf32>
    %cst_60 = arith.constant 1.000000e+00 : f32
    %265 = vector.broadcast %cst_60 : f32 to vector<32x32xf32>
    %266 = arith.subf %265, %258 : vector<32x32xf32>
    %267 = arith.mulf %266, %264 : vector<32x32xf32>
    %268 = arith.mulf %258, %238 : vector<32x32xf32>
    %269 = arith.addf %267, %268 : vector<32x32xf32>
    %c0_61 = arith.constant 0 : index
    %c0_62 = arith.constant 0 : index
    %270 = vector.load %arg10[%c0_61, %c0_62] : memref<32x4xf32, #tpu.memory_space<vmem>>, vector<32x4xf32>
    %cst_63 = arith.constant dense<0.000000e+00> : vector<32x4xf32>
    %271 = tpu.matmul %269, %270, %cst_63 {dimension_numbers = #tpu.dot_dimension_numbers<[1], [0], [0], [1], [0, 0, 1, 1], [], []>} : vector<32x32xf32>, vector<32x4xf32>, vector<32x4xf32> -> vector<32x4xf32>
    %c0_64 = arith.constant 0 : index
    %c0_65 = arith.constant 0 : index
    %272 = vector.load %arg11[%c0_64, %c0_65] : memref<1x4xf32, #tpu.memory_space<vmem>>, vector<1x4xf32>
    %273 = vector.broadcast %272 : vector<1x4xf32> to vector<32x4xf32>
    %274 = arith.addf %271, %273 : vector<32x4xf32>
    %c0_66 = arith.constant 0 : index
    %c0_67 = arith.constant 0 : index
    %275 = vector.load %arg12[%c0_66, %c0_67] : memref<32x4xf32, #tpu.memory_space<vmem>>, vector<32x4xf32>
    tpu.vector_store %arg12[%c0_66, %c0_67], %274 {strides = array<i32>} : memref<32x4xf32, #tpu.memory_space<vmem>>, vector<32x4xf32>,
    return
  }
  func.func @transform_0(%arg0: i32) -> (i32, i32) {
    %c0_i32 = arith.constant 0 : i32
    %c0_i32_0 = arith.constant 0 : i32
    %c0_i32_1 = arith.constant 0 : i32
    return %c0_i32, %c0_i32_0 : i32, i32
  }
  func.func @transform_1(%arg0: i32) -> (i32, i32) {
    %c0_i32 = arith.constant 0 : i32
    %c0_i32_0 = arith.constant 0 : i32
    %c0_i32_1 = arith.constant 0 : i32
    return %c0_i32, %c0_i32_0 : i32, i32
  }
  func.func @transform_2(%arg0: i32) -> (i32, i32) {
    %c0_i32 = arith.constant 0 : i32
    %c0_i32_0 = arith.constant 0 : i32
    %c0_i32_1 = arith.constant 0 : i32
    return %c0_i32, %c0_i32_0 : i32, i32
  }
  func.func @transform_3(%arg0: i32) -> (i32, i32) {
    %c0_i32 = arith.constant 0 : i32
    %c0_i32_0 = arith.constant 0 : i32
    %c0_i32_1 = arith.constant 0 : i32
    return %c0_i32, %c0_i32_0 : i32, i32
  }
  func.func @transform_4(%arg0: i32) -> (i32, i32) {
    %c0_i32 = arith.constant 0 : i32
    %c0_i32_0 = arith.constant 0 : i32
    %c0_i32_1 = arith.constant 0 : i32
    return %c0_i32, %c0_i32_0 : i32, i32
  }
  func.func @transform_5(%arg0: i32) -> (i32, i32) {
    %c0_i32 = arith.constant 0 : i32
    %c0_i32_0 = arith.constant 0 : i32
    %c0_i32_1 = arith.constant 0 : i32
    return %c0_i32, %c0_i32_0 : i32, i32
  }
  func.func @transform_6(%arg0: i32) -> (i32, i32) {
    %c0_i32 = arith.constant 0 : i32
    %c0_i32_0 = arith.constant 0 : i32
    %c0_i32_1 = arith.constant 0 : i32
    return %c0_i32, %c0_i32_0 : i32, i32
  }
  func.func @transform_7(%arg0: i32) -> (i32, i32) {
    %c0_i32 = arith.constant 0 : i32
    %c0_i32_0 = arith.constant 0 : i32
    %c0_i32_1 = arith.constant 0 : i32
    return %c0_i32, %c0_i32_0 : i32, i32
  }
  func.func @transform_8(%arg0: i32) -> (i32, i32) {
    %c0_i32 = arith.constant 0 : i32
    %c0_i32_0 = arith.constant 0 : i32
    %c0_i32_1 = arith.constant 0 : i32
    return %c0_i32, %c0_i32_0 : i32, i32
  }
  func.func @transform_9(%arg0: i32) -> (i32, i32) {
    %c0_i32 = arith.constant 0 : i32
    %c0_i32_0 = arith.constant 0 : i32
    %c0_i32_1 = arith.constant 0 : i32
    return %c0_i32, %c0_i32_0 : i32, i32
  }
  func.func @transform_10(%arg0: i32) -> (i32, i32) {
    %c0_i32 = arith.constant 0 : i32
    %c0_i32_0 = arith.constant 0 : i32
    %c0_i32_1 = arith.constant 0 : i32
    return %c0_i32, %c0_i32_0 : i32, i32
  }
  func.func @transform_11(%arg0: i32) -> (i32, i32) {
    %c0_i32 = arith.constant 0 : i32
    %c0_i32_0 = arith.constant 0 : i32
    %c0_i32_1 = arith.constant 0 : i32
    return %c0_i32, %c0_i32_0 : i32, i32
  }
}

</mosaic_0001>

<bundles_post_ra>
// kernel: tpu_custom_call.1
= control target key start
LH: loop header
LB: loop body
LE: loop exit
PB: predicated region body
PF: predicated region fallthrough
CT: control target
= control target key end

     0   :  { %16 = vsyncpa [#allocation3], 0  ;;  %s4876_s0 = inlined_call_operand.vmem [shape: f32[32,32], index: 0, kind: input, shape index: {}]   ;;  %s4877_s1 = inlined_call_operand.hbm [shape: f32[32,32], index: 1, kind: input, shape index: {}]   ;;  %s4878_s2 = inlined_call_operand.hbm [shape: f32[32,256], index: 2, kind: input, shape index: {}]   ;;  %s4879_s3 = inlined_call_operand.hbm [shape: f32[32,256], index: 3, kind: input, shape index: {}]   ;;  %s4880_s4 = inlined_call_operand.vmem [shape: f32[1,256], index: 4, kind: input, shape index: {}]   ;;  %s4881_s5 = inlined_call_operand.hbm [shape: f32[32,96], index: 5, kind: input, shape index: {}]   ;;  %s4882_s6 = inlined_call_operand.hbm [shape: f32[32,96], index: 6, kind: input, shape index: {}]   ;;  %s4883_s7 = inlined_call_operand.vmem [shape: f32[1,96], index: 7, kind: input, shape index: {}]   ;;  %s4884_s8 = inlined_call_operand.vmem [shape: f32[1,32], index: 8, kind: input, shape index: {}]   ;;  %s4885_s9 = inlined_call_operand.vmem [shape: f32[32,4], index: 9, kind: input, shape index: {}]   ;;  %s4886_s10 = inlined_call_operand.vmem [shape: f32[1,4], index: 10, kind: input, shape index: {}]   ;;  %s4887_s11 = inlined_call_operand.vmem [shape: f32[32,4], index: 11, kind: output, shape index: {}]  }
   0x1   :  { %17 = vsyncpa [#allocation5], 0 }
   0x2   :  { %18 = vsyncpa [#allocation8], 0  ;;  %s4094_s17 = smov [#allocation4]   ;;  %s3978_s21 = scalar_lea.hbm %s4878_s2, 1024 }
   0x3   :  { %s38_s18 = sshll.u32 %s4094_s17, 4  ;;  %p3979_p0 = scmp.ne.s32.totalorder %s4878_s2, %s3978_s21  ;;  %s39_s18 = int_to_ptr.vmem [resolvable:$true] %s38_s18 }
   0x4   :  { %p3982_p1 = scmp.lt.u32.totalorder %s3978_s21, %s4878_s2 }
   0x6   :  { %p3984_p2 = pnand %p3982_p1, %p3979_p0 }
   0x8   :  { %3987 = shalt.err (!%p3984_p2)
}
   0x9   :  { %s3988_s26 = scalar_lea.vmem %s39_s18, 1024  ;;  %p3993_p4 = scmp.lt.s32.totalorder %s39_s18, %s39_s18 }
   0xa   :  { %p3989_p3 = scmp.ne.s32.totalorder %s39_s18, %s3988_s26  ;;  %p3994_p5 = scmp.lt.s32.totalorder %s3988_s26, %s3988_s26 }
   0xc   :  { %p3995_p6 = por %p3994_p5, %p3993_p4 }
   0xe   :  { %p3996_p7 = pnand %p3995_p6, %p3989_p3 }
  0x10   :  { %3999 = shalt.err (!%p3996_p7)
}
  0x11   :  { %s4095_s27 = smov 256   ;;  %s4096_s28 = smov 16  }
  0x12   :  { %44 = dma.hbm_to_vmem [thread:$0]  %s4878_s2, 1024, %s39_s18, [#allocation5], %s4095_s27, %s4095_s27, %s4096_s28  }
  0x13   :  { %s4097_s12 = smov [#allocation7]   ;;  %s4098_s14 = smov [#allocation2]  }
  0x14   :  { %s64_s13 = sshll.u32 %s4097_s12, 4  ;;  %s26_s15 = sshll.u32 %s4098_s14, 4  ;;  %s65_s13 = int_to_ptr.vmem [resolvable:$true] %s64_s13  ;;  %s27_s15 = int_to_ptr.vmem [resolvable:$true] %s26_s15 }
  0x15   :  { %s4000_s19 = scalar_lea.hbm %s4881_s5, 512 }
  0x16   :  { %p4001_p8 = scmp.ne.s32.totalorder %s4881_s5, %s4000_s19  ;;  %p4004_p9 = scmp.lt.u32.totalorder %s4000_s19, %s4881_s5 }
  0x18   :  { %p4006_p10 = pnand %p4004_p9, %p4001_p8 }
  0x1a   :  { %4009 = shalt.err (!%p4006_p10)
}
  0x1b   :  { %s4010_s2 = scalar_lea.vmem %s65_s13, 512  ;;  %p4015_p12 = scmp.lt.s32.totalorder %s65_s13, %s65_s13 }
  0x1c   :  { %p4011_p11 = scmp.ne.s32.totalorder %s65_s13, %s4010_s2  ;;  %p4016_p13 = scmp.lt.s32.totalorder %s4010_s2, %s4010_s2 }
  0x1e   :  { %p4017_p0 = por %p4016_p13, %p4015_p12 }
  0x20   :  { %p4018_p1 = pnand %p4017_p0, %p4011_p11 }
  0x22   :  { %4021 = shalt.err (!%p4018_p1)
}
  0x23   :  { %s4099_s18 = smov 128   ;;  %s4100_s24 = smov 8  }
  0x24   :  { %70 = dma.hbm_to_vmem [thread:$0]  %s4881_s5, 512, %s65_s13, [#allocation8], %s4099_s18, %s4099_s18, %s4100_s24  }
  0x25   :  { %s4022_s12 = scalar_lea.hbm %s4877_s1, 512 }
  0x26   :  { %p4023_p2 = scmp.ne.s32.totalorder %s4877_s1, %s4022_s12  ;;  %p4026_p3 = scmp.lt.u32.totalorder %s4022_s12, %s4877_s1 }
  0x28   :  { %p4028_p4 = pnand %p4026_p3, %p4023_p2 }
  0x2a   :  { %4031 = shalt.err (!%p4028_p4)
}
  0x2b   :  { %s4032_s20 = scalar_lea.vmem %s27_s15, 512  ;;  %p4037_p6 = scmp.lt.s32.totalorder %s27_s15, %s27_s15 }
  0x2c   :  { %p4033_p5 = scmp.ne.s32.totalorder %s27_s15, %s4032_s20  ;;  %p4038_p7 = scmp.lt.s32.totalorder %s4032_s20, %s4032_s20 }
  0x2e   :  { %p4039_p8 = por %p4038_p7, %p4037_p6 }
  0x30   :  { %p4040_p9 = pnand %p4039_p8, %p4033_p5 }
  0x32   :  { %4043 = shalt.err (!%p4040_p9)
}
  0x33   :  { %32 = dma.hbm_to_vmem [thread:$0]  %s4877_s1, 512, %s27_s15, [#allocation3], %s4099_s18, %s4099_s18, %s4100_s24  }
  0x34   :  { %s4101_s21 = smov [#allocation6]   ;;  %s4102_s23 = smov [#allocation9]  }
  0x35   :  { %s50_s22 = sshll.u32 %s4101_s21, 4  ;;  %s76_s2 = sshll.u32 %s4102_s23, 4  ;;  %s51_s22 = int_to_ptr.vmem [resolvable:$true] %s50_s22  ;;  %s77_s2 = int_to_ptr.vmem [resolvable:$true] %s76_s2 }
  0x36   :  { %s4044_s29 = scalar_lea.hbm %s4879_s3, 1024 }
  0x37   :  { %p4045_p10 = scmp.ne.s32.totalorder %s4879_s3, %s4044_s29  ;;  %p4048_p11 = scmp.lt.u32.totalorder %s4044_s29, %s4879_s3 }
  0x39   :  { %p4050_p12 = pnand %p4048_p11, %p4045_p10 }
  0x3b   :  { %4053 = shalt.err (!%p4050_p12)
}
  0x3c   :  { %s4054_s1 = scalar_lea.vmem %s51_s22, 1024  ;;  %p4059_p0 = scmp.lt.s32.totalorder %s51_s22, %s51_s22 }
  0x3d   :  { %p4055_p13 = scmp.ne.s32.totalorder %s51_s22, %s4054_s1  ;;  %p4060_p1 = scmp.lt.s32.totalorder %s4054_s1, %s4054_s1 }
  0x3f   :  { %p4061_p2 = por %p4060_p1, %p4059_p0 }
  0x41   :  { %p4062_p3 = pnand %p4061_p2, %p4055_p13 }
  0x43   :  { %4065 = shalt.err (!%p4062_p3)
}
  0x44   :  { %56 = dma.hbm_to_vmem [thread:$0]  %s4879_s3, 1024, %s51_s22, [#allocation5], %s4095_s27, %s4095_s27, %s4096_s28  }
  0x45   :  { %s4066_s5 = scalar_lea.hbm %s4882_s6, 512 }
  0x46   :  { %p4067_p4 = scmp.ne.s32.totalorder %s4882_s6, %s4066_s5  ;;  %p4070_p5 = scmp.lt.u32.totalorder %s4066_s5, %s4882_s6 }
  0x48   :  { %p4072_p6 = pnand %p4070_p5, %p4067_p4 }
  0x4a   :  { %4075 = shalt.err (!%p4072_p6)
}
  0x4b   :  { %s4076_s26 = scalar_lea.vmem %s77_s2, 512  ;;  %p4081_p8 = scmp.lt.s32.totalorder %s77_s2, %s77_s2 }
  0x4c   :  { %p4077_p7 = scmp.ne.s32.totalorder %s77_s2, %s4076_s26  ;;  %p4082_p9 = scmp.lt.s32.totalorder %s4076_s26, %s4076_s26 }
  0x4e   :  { %p4083_p10 = por %p4082_p9, %p4081_p8 }
  0x50   :  { %p4084_p11 = pnand %p4083_p10, %p4077_p7 }
  0x52   :  { %4087 = shalt.err (!%p4084_p11)
}
  0x53   :  { %82 = dma.hbm_to_vmem [thread:$0]  %s4882_s6, 512, %s77_s2, [#allocation8], %s4099_s18, %s4099_s18, %s4100_s24  }
  0x54   :  { %4088 = dma.done.wait [#allocation3], 512  }
  0x55   :  { %4089 = vsyncadd [#allocation3], 4294966784 }
  0x56   :  { %4090 = dma.done.wait [#allocation5], 2048  }
  0x57   :  { %4091 = vsyncadd [#allocation5], 4294965248 }
  0x58   :  { %4092 = dma.done.wait [#allocation8], 1024  }
  0x59   :  { %4093 = vsyncadd [#allocation8], 4294966272  ;;  %vm114_vm0 = vcmask 261120   ;;  %v4245_v0 = vld [vmem:[%s4876_s0] sm:$0xff]  ;;  %v4250_v1 = vld [vmem:[%s4876_s0 + $0x8] sm:$0xff]  ;;  %v4103_v22 = vmov 0.0   ;;  %v432_v39 = vlaneseq }
  0x5a   :  { %v4255_v2 = vld [vmem:[%s4876_s0 + $0x10] sm:$0xff]  ;;  %v3604_v3 = vpack.c.bf16 %v4250_v1, %v4245_v0  ;;  %v4262_v4 = vld [vmem:[%s4876_s0 + $0x18] sm:$0xff]  ;;  %v110_v5 = vld [vmem:[#allocation2] sm:$0xff]  ;;  %304 = vmatprep.mubr.f32.mxu1 %v4103_v22  ;;  %s4104_s16 = smov 64   ;;  %s4105_s15 = smov 96   ;;  %vm3085_vm1 = vcmask 31744  }
  0x5b   :  { %v3608_v6 = vpack.c.bf16 %v4262_v4, %v4255_v2  ;;  %3360 = vmatprep.mubr.msk.f32.mxu0 %vm114_vm0, %v110_v5  ;;  %v221_v7 = vld [vmem:[#allocation6 + $0x8] sm:$0xff]  ;;  %v223_v8 = vld [vmem:[#allocation6 + $0x18] sm:$0xff]  ;;  %v220_v9 = vld [vmem:[#allocation6] sm:$0xff]  ;;  %v433_v40 = vshrl.u32 %v432_v39, 7  ;;  %s4106_s17 = smov 32  }
  0x5c   :  { %3605 = vmatprep.subr.bf16.mxu0 %v3604_v3  ;;  %v222_v10 = vld [vmem:[#allocation6 + $0x10] sm:$0xff]  ;;  %v3612_v11 = vpack.c.bf16 %v223_v8, %v221_v7  ;;  %v225_v13 = vld [vmem:[#allocation6 + $0x28] sm:$0xff]  ;;  %v227_v14 = vld [vmem:[#allocation6 + $0x38] sm:$0xff] }
  0x5d   :  { %3607 = vmatpush3.bf16.msra.mxu0 %v3604_v3  ;;  %v3614_v12 = vpack.c.bf16 %v222_v10, %v220_v9  ;;  %v224_v15 = vld [vmem:[#allocation6 + $0x20] sm:$0xff]  ;;  %v3616_v16 = vpack.c.bf16 %v227_v14, %v225_v13  ;;  %v226_v17 = vld [vmem:[#allocation6 + $0x30] sm:$0xff]  ;;  %v111_v19 = vld [vmem:[#allocation2 + $0x8] sm:$0xff]  ;;  %v438_v42 = vsub.s32 1, %v433_v40  ;;  %v434_v54 = vsub.s32 0, %v433_v40 }
  0x5e   :  { %3609 = vmatprep.subr.bf16.mxu0 %v3608_v6  ;;  %3613 = vmatprep.subr.bf16.mxu1 %v3612_v11  ;;  %v3618_v18 = vpack.c.bf16 %v226_v17, %v224_v15  ;;  %v112_v20 = vld [vmem:[#allocation2 + $0x10] sm:$0xff]  ;;  %v113_v21 = vld [vmem:[#allocation2 + $0x18] sm:$0xff]  ;;  %v213_v23 = vld [vmem:[#allocation4 + $0x8] sm:$0xff] }
  0x5f   :  { %3615 = vmatpush1.bf16.msra.mxu1 %v3614_v12  ;;  %v215_v24 = vld [vmem:[#allocation4 + $0x18] sm:$0xff]  ;;  %v212_v26 = vld [vmem:[#allocation4] sm:$0xff]  ;;  %v214_v27 = vld [vmem:[#allocation4 + $0x10] sm:$0xff] }
  0x60   :  { %3617 = vmatprep.subr.bf16.mxu1 %v3616_v16  ;;  %v3620_v25 = vpack.c.bf16 %v215_v24, %v213_v23  ;;  %v217_v28 = vld [vmem:[#allocation4 + $0x28] sm:$0xff]  ;;  %v219_v29 = vld [vmem:[#allocation4 + $0x38] sm:$0xff]  ;;  %v3622_v30 = vpack.c.bf16 %v214_v27, %v212_v26  ;;  %v216_v33 = vld [vmem:[#allocation4 + $0x20] sm:$0xff] }
  0x61   :  { %3611 = vmatpush3.bf16.msra.mxu0 %v3608_v6  ;;  %v3624_v32 = vpack.c.bf16 %v219_v29, %v217_v28  ;;  %v218_v34 = vld [vmem:[#allocation4 + $0x30] sm:$0xff]  ;;  %v430_v41 = vld [vmem:[%s4880_s4] sm:$0x3]  ;;  %v459_v44 = vld [vmem:[#allocation7 + $0x8] sm:$0xff] }
  0x62   :  { %v3626_v36 = vpack.c.bf16 %v218_v34, %v216_v33  ;;  %v458_v43 = vld [vmem:[#allocation7] sm:$0xff]  ;;  %v439_v46 = vrot.slane %v430_v41, %v438_v42  ;;  %v460_v47 = vld [vmem:[#allocation7 + $0x10] sm:$0xff]  ;;  %v461_v48 = vld [vmem:[#allocation7 + $0x18] sm:$0xff]  ;;  %v435_v55 = vrot.slane %v430_v41, %v434_v54 }
  0x63   :  { %3619 = vmatpush1.bf16.msra.mxu1 %v3618_v18  ;;  %v4293_v45 = vpack.c.bf16 %v459_v44, %v458_v43  ;;  %v4299_v49 = vpack.c.bf16 %v461_v48, %v460_v47  ;;  %v462_v50 = vld [vmem:[#allocation9] sm:$0xff]  ;;  %v463_v51 = vld [vmem:[#allocation9 + $0x8] sm:$0xff]  ;;  %v464_v62 = vld [vmem:[#allocation9 + $0x10] sm:$0xff] }
  0x64   :  { %3361 = vmatmul.mubr.msk.f32.vlgmr.msra.gmra.mrb[0].mxu0 %vm114_vm0, %v111_v19  ;;  %3621 = vmatprep.subr.bf16.mxu1 %v3620_v25  ;;  %v4306_v52 = vpack.c.bf16 %v463_v51, %v462_v50  ;;  %v3110_v53 = vld [vmem:[%s4884_s8] ss:$0 sm:$0xff]  ;;  %v465_v63 = vld [vmem:[#allocation9 + $0x18] sm:$0xff] }
  0x65   :  { %3363 = vmatprep.mubr.msk.f32.mxu0 %vm114_vm0, %v112_v20  ;;  %3629 = vmatprep.subr.bf16.mxu0 %v4293_v45  ;;  %v4364_v28 = vld [vmem:[%s4883_s7] ss:$0 sm:$0xff] }
  0x66   :  { %3631 = vmatpush3.bf16.msra.mxu0 %v4293_v45  ;;  %692 = vrot.lane.b32.xlu0 %v3110_v53, %s4104_s16 }
  0x67   :  { %3633 = vmatprep.subr.bf16.mxu0 %v4299_v49 }
  0x68   :  { %3364 = vmatmul.mubr.msk.f32.gmra.mrb[2].mxu0 %vm114_vm0, %v113_v21 }
  0x6a   :  { %3635 = vmatpush3.bf16.msra.mxu0 %v4299_v49 }
  0x6b   :  { %3637 = vmatprep.subr.bf16.mxu0 %v4306_v52 }
  0xd8   :  { %v4351_v19 = vpop.permute.xlu0 %692 }
 0x137   :  { %v3362_v31 = vpop.f32.mrb[0].mxu0 }
 0x138   :  { %v193_v35 = vpop.f32.mrb[1].mxu0 }
 0x139   :  { %3101 = vmatmul.mubr.msk.f32.vlgmr.msra.gmra.mrb[0].mxu1 %vm114_vm0, %v193_v35 }
 0x13a   :  { %3623 = vmatpush1.bf16.msra.mxu1 %v3622_v30  ;;  %310 = vmatprep.mubr.f32.mxu1 %v4103_v22 }
 0x13b   :  { %v3365_v37 = vpop.f32.mrb[2].mxu0  ;;  %3625 = vmatprep.subr.bf16.mxu1 %v3624_v32 }
 0x13c   :  { %v203_v38 = vpop.f32.mrb[3].mxu0 }
 0x13d   :  { %3102 = vmatmul.mubr.msk.f32.gmra.mrb[2].mxu1 %vm114_vm0, %v3362_v31 }
 0x13e   :  { %316 = vmatprep.mubr.f32.mxu1 %v4103_v22  ;;  %3627 = vmatpush1.bf16.msra.mxu1 %v3626_v36 }
 0x13f   :  { %3661 = vmatprep.subr.bf16.mxu1 %v4293_v45 }
 0x141   :  { %3103 = vmatmul.mubr.msk.f32.gmra.mrb[4].mxu1 %vm114_vm0, %v203_v38 }
 0x142   :  { %322 = vmatprep.mubr.f32.mxu1 %v4103_v22 }
 0x145   :  { %3104 = vmatmul.mubr.msk.f32.gmra.mrb[6].mxu1 %vm114_vm0, %v3365_v37 }
 0x146   :  { %405 = vmatprep.mubr.f32.mxu1 %v4103_v22 }
 0x149   :  { %3105 = vmatmul.mubr.msk.f32.vlgmr.msra.gmra.mrb[0].mxu1 %vm114_vm0, %v4245_v0 }
 0x14a   :  { %411 = vmatprep.mubr.f32.mxu1 %v4103_v22  ;;  %3663 = vmatpush3.bf16.msra.mxu1 %v4293_v45 }
 0x14b   :  { %3665 = vmatprep.subr.bf16.mxu1 %v4299_v49 }
 0x14d   :  { %3106 = vmatmul.mubr.msk.f32.gmra.mrb[2].mxu1 %vm114_vm0, %v4250_v1 }
 0x14e   :  { %417 = vmatprep.mubr.f32.mxu1 %v4103_v22  ;;  %3667 = vmatpush3.bf16.msra.mxu1 %v4299_v49 }
 0x14f   :  { %3677 = vmatprep.subr.bf16.mxu1 %v4293_v45 }
 0x151   :  { %3107 = vmatmul.mubr.msk.f32.gmra.mrb[4].mxu1 %vm114_vm0, %v4255_v2 }
 0x152   :  { %423 = vmatprep.mubr.f32.mxu1 %v4103_v22 }
 0x155   :  { %3108 = vmatmul.mubr.msk.f32.gmra.mrb[6].mxu1 %vm114_vm0, %v4262_v4  ;;  %v4323_v4 = vpack.c.bf16 %v465_v63, %v464_v62 }
 0x21c   :  { %v407_v56 = vpop.f32.mrb[0].mxu1 }
 0x21d   :  { %v442_v57 = vadd.f32 %v435_v55, %v407_v56  ;;  %v409_v58 = vpop.f32.mrb[1].mxu1 }
 0x21e   :  { %v4313_v59 = vadd.f32 %v439_v46, %v409_v58 }
 0x21f   :  { %v4315_v60 = vmax.f32 %v442_v57, 0.0 }
 0x220   :  { %v413_v61 = vpop.f32.mrb[2].mxu1 }
 0x221   :  { %v444_v0 = vadd.f32 %v435_v55, %v413_v61  ;;  %v415_v1 = vpop.f32.mrb[3].mxu1  ;;  %3374 = vmatprep.mubr.msk.f32.mxu0 %vm114_vm0, %v4315_v60 }
 0x222   :  { %v4319_v2 = vadd.f32 %v439_v46, %v415_v1 }
 0x223   :  { %v4321_v3 = vmax.f32 %v444_v0, 0.0 }
 0x224   :  { %v419_v5 = vpop.f32.mrb[4].mxu1 }
 0x225   :  { %v446_v6 = vadd.f32 %v435_v55, %v419_v5  ;;  %v421_v7 = vpop.f32.mrb[5].mxu1  ;;  %3375 = vmatmul.mubr.msk.f32.vlgmr.msra.gmra.mrb[4].mxu0 %vm114_vm0, %v4321_v3 }
 0x226   :  { %v4327_v8 = vadd.f32 %v439_v46, %v421_v7  ;;  %3639 = vmatpush3.bf16.msra.mxu0 %v4306_v52 }
 0x227   :  { %v4330_v9 = vmax.f32 %v446_v6, 0.0  ;;  %3641 = vmatprep.subr.bf16.mxu0 %v4323_v4 }
 0x228   :  { %v425_v10 = vpop.f32.mrb[6].mxu1 }
 0x229   :  { %v448_v11 = vadd.f32 %v435_v55, %v425_v10  ;;  %v427_v12 = vpop.f32.mrb[7].mxu1  ;;  %3377 = vmatprep.mubr.msk.f32.mxu0 %vm114_vm0, %v4330_v9 }
 0x22a   :  { %v4335_v13 = vadd.f32 %v439_v46, %v427_v12  ;;  %3643 = vmatpush3.bf16.msra.mxu0 %v4323_v4 }
 0x22b   :  { %v4338_v14 = vmax.f32 %v448_v11, 0.0  ;;  %3645 = vmatprep.subr.bf16.mxu0 %v4293_v45 }
 0x22d   :  { %3378 = vmatmul.mubr.msk.f32.gmra.mrb[6].mxu0 %vm114_vm0, %v4338_v14 }
 0x22e   :  { %3388 = vmatprep.mubr.f32.mxu0 %v4103_v22 }
 0x231   :  { %3389 = vmatmul.mubr.f32.vlgmr.msra.gmra.mrb[8].mxu0 %v4103_v22 }
 0x232   :  { %3391 = vmatprep.mubr.f32.mxu0 %v4103_v22  ;;  %3647 = vmatpush3.bf16.msra.mxu0 %v4293_v45 }
 0x233   :  { %3649 = vmatprep.subr.bf16.mxu0 %v4299_v49 }
 0x235   :  { %3392 = vmatmul.mubr.f32.gmra.mrb[10].mxu0 %v4103_v22 }
 0x236   :  { %3651 = vmatpush3.bf16.msra.mxu0 %v4299_v49 }
 0x237   :  { %3653 = vmatprep.subr.bf16.mxu0 %v4306_v52 }
 0x2f8   :  { %v3376_v15 = vpop.f32.mrb[4].mxu0 }
 0x2f9   :  { %v557_v16 = vpop.f32.mrb[5].mxu0  ;;  %v563_v29 = vadd.f32 %v3376_v15, %v4364_v28 }
 0x2fa   :  { %v558_v30 = vadd.f32 %v4364_v28, %v557_v16 }
 0x300   :  { %v3379_v17 = vpop.f32.mrb[6].mxu0 }
 0x301   :  { %v567_v18 = vpop.f32.mrb[7].mxu0  ;;  %v573_v33 = vadd.f32 %v3379_v17, %v4364_v28 }
 0x302   :  { %v568_v34 = vadd.f32 %v4364_v28, %v567_v18 }
 0x304   :  { %v3390_v20 = vpop.f32.mrb[8].mxu0 }
 0x305   :  { %v645_v21 = vpop.f32.mrb[9].mxu0  ;;  %v696_v23 = vadd.f32 %v3390_v20, %v4351_v19  ;;  %v665_v31 = vadd.f32 %v3390_v20, %v563_v29 }
 0x306   :  { %v695_v24 = vadd.f32 %v4351_v19, %v645_v21  ;;  %v664_v32 = vadd.f32 %v645_v21, %v558_v30 }
 0x307   :  { %705 = vrot.lane.b32.xlu1 %v696_v23, %s4104_s16  ;;  %v3116_v35 = vmul.f32 -1.442695, %v665_v31 }
 0x308   :  { %703 = vrot.lane.b32.xlu0 %v695_v24, %s4104_s16  ;;  %v3393_v22 = vpop.f32.mrb[10].mxu0  ;;  %v3115_v37 = vmul.f32 -1.442695, %v664_v32 }
 0x309   :  { %v698_v25 = vadd.f32 %v3393_v22, %v4351_v19  ;;  %v655_v26 = vpop.f32.mrb[11].mxu0  ;;  %v667_v36 = vadd.f32 %v3393_v22, %v573_v33  ;;  %3785 = vpow2.f32 %v3116_v35 }
 0x30a   :  { %v697_v27 = vadd.f32 %v4351_v19, %v655_v26  ;;  %v666_v38 = vadd.f32 %v655_v26, %v568_v34  ;;  %3787 = vpow2.f32 %v3115_v37 }
 0x30b   :  { %v3118_v39 = vmul.f32 -1.442695, %v667_v36 }
 0x30c   :  { %709 = vrot.lane.b32.xlu0 %v698_v25, %s4104_s16  ;;  %707 = vrot.lane.b32.xlu1 %v697_v27, %s4104_s16  ;;  %v3117_v40 = vmul.f32 -1.442695, %v666_v38 }
 0x30d   :  { %3789 = vpow2.f32 %v3118_v39 }
 0x30e   :  { %3791 = vpow2.f32 %v3117_v40 }
 0x313   :  { %v3786_v41 = vpop.eup %3785 }
 0x314   :  { %v3788_v42 = vpop.eup %3787  ;;  %v681_v43 = vadd.f32 1.0, %v3786_v41 }
 0x315   :  { %v680_v46 = vadd.f32 1.0, %v3788_v42 }
 0x316   :  { %3793 = vrcp.f32 %v681_v43 }
 0x317   :  { %v3790_v44 = vpop.eup %3789  ;;  %3795 = vrcp.f32 %v680_v46 }
 0x318   :  { %v3792_v47 = vpop.eup %3791  ;;  %v683_v48 = vadd.f32 1.0, %v3790_v44 }
 0x319   :  { %v682_v50 = vadd.f32 1.0, %v3792_v47 }
 0x31a   :  { %3797 = vrcp.f32 %v683_v48 }
 0x31b   :  { %3799 = vrcp.f32 %v682_v50 }
 0x320   :  { %v3794_v51 = vpop.eup %3793 }
 0x321   :  { %v3796_v54 = vpop.eup %3795  ;;  %v744_v23 = vsub.f32 1.0, %v3794_v51  ;;  %v768_v25 = vmul.f32 0.0, %v3794_v51 }
 0x322   :  { %v743_v22 = vsub.f32 1.0, %v3796_v54 }
 0x324   :  { %v3798_v58 = vpop.eup %3797 }
 0x325   :  { %v3800_v61 = vpop.eup %3799  ;;  %v770_v36 = vmul.f32 0.0, %v3798_v58 }
 0x326   :  { %v745_v35 = vsub.f32 1.0, %v3800_v61  ;;  %v769_v39 = vmul.f32 0.0, %v3800_v61 }
 0x379   :  { %v706_v53 = vpop.permute.xlu1 %705 }
 0x37a   :  { %v716_v55 = vmul.f32 %v3794_v51, %v706_v53  ;;  %v704_v56 = vpop.permute.xlu0 %703 }
 0x37b   :  { %v715_v57 = vmul.f32 %v3796_v54, %v704_v56 }
 0x37c   :  { %725 = vrot.lane.b32.xlu0 %v716_v55, %s4104_s16 }
 0x37d   :  { %723 = vrot.lane.b32.xlu1 %v715_v57, %s4104_s16 }
 0x37e   :  { %v710_v62 = vpop.permute.xlu0 %709  ;;  %v708_v63 = vpop.permute.xlu1 %707 }
 0x37f   :  { %v718_v0 = vmul.f32 %v3798_v58, %v710_v62  ;;  %v717_v1 = vmul.f32 %v3800_v61, %v708_v63 }
 0x381   :  { %729 = vrot.lane.b32.xlu0 %v718_v0, %s4104_s16  ;;  %727 = vrot.lane.b32.xlu1 %v717_v1, %s4104_s16 }
 0x3ee   :  { %v726_v5 = vpop.permute.xlu0 %725 }
 0x3ef   :  { %v736_v6 = vadd.f32 %v726_v5, %v563_v29  ;;  %v724_v7 = vpop.permute.xlu1 %723  ;;  %v767_v29 = vmul.f32 0.0, %v3796_v54 }
 0x3f0   :  { %v735_v10 = vadd.f32 %v724_v7, %v558_v30 }
 0x3f1   :  { %3801 = vtanh.f32 %v736_v6 }
 0x3f2   :  { %3803 = vtanh.f32 %v735_v10 }
 0x3f3   :  { %v730_v11 = vpop.permute.xlu0 %729  ;;  %v728_v12 = vpop.permute.xlu1 %727 }
 0x3f4   :  { %v738_v15 = vadd.f32 %v730_v11, %v573_v33  ;;  %v737_v16 = vadd.f32 %v728_v12, %v568_v34  ;;  %v746_v33 = vsub.f32 1.0, %v3798_v58 }
 0x3f6   :  { %3805 = vtanh.f32 %v738_v15 }
 0x3f7   :  { %3807 = vtanh.f32 %v737_v16 }
 0x3fb   :  { %v3802_v17 = vpop.eup %3801 }
 0x3fc   :  { %v3804_v18 = vpop.eup %3803  ;;  %753 = vrot.lane.b32.xlu0 %v3802_v17, %s4105_s15 }
 0x3fd   :  { %751 = vrot.lane.b32.xlu1 %v3804_v18, %s4105_s15 }
 0x400   :  { %v3806_v20 = vpop.eup %3805 }
 0x401   :  { %v3808_v21 = vpop.eup %3807  ;;  %757 = vrot.lane.b32.xlu0 %v3806_v20, %s4105_s15 }
 0x402   :  { %755 = vrot.lane.b32.xlu1 %v3808_v21, %s4105_s15 }
 0x405   :  { %777 = vrot.lane.b32.xlu0 %v4321_v3, %s4105_s15 }
 0x406   :  { %775 = vrot.lane.b32.xlu1 %v4315_v60, %s4105_s15 }
 0x409   :  { %781 = vrot.lane.b32.xlu0 %v4338_v14, %s4105_s15 }
 0x40a   :  { %779 = vrot.lane.b32.xlu1 %v4330_v9, %s4105_s15 }
 0x46e   :  { %v754_v24 = vpop.permute.xlu0 %753 }
 0x46f   :  { %v764_v26 = vmul.f32 %v754_v24, %v744_v23  ;;  %v752_v27 = vpop.permute.xlu1 %751 }
 0x470   :  { %v763_v30 = vmul.f32 %v752_v27, %v743_v22 }
 0x471   :  { %v4386_v31 = vadd.f32 %v768_v25, %v764_v26 }
 0x472   :  { %v4388_v32 = vadd.f32 %v767_v29, %v763_v30 }
 0x473   :  { %882 = vrot.lane.b32.xlu0 %v4386_v31, %s4105_s15  ;;  %v758_v34 = vpop.permute.xlu0 %757 }
 0x474   :  { %v766_v37 = vmul.f32 %v758_v34, %v746_v33  ;;  %v756_v38 = vpop.permute.xlu1 %755  ;;  %880 = vrot.lane.b32.xlu1 %v4388_v32, %s4105_s15 }
 0x475   :  { %v765_v40 = vmul.f32 %v756_v38, %v745_v35 }
 0x476   :  { %v4394_v41 = vadd.f32 %v770_v36, %v766_v37 }
 0x477   :  { %v4396_v42 = vadd.f32 %v769_v39, %v765_v40  ;;  %v778_v43 = vpop.permute.xlu0 %777 }
 0x478   :  { %v776_v44 = vpop.permute.xlu1 %775  ;;  %886 = vrot.lane.b32.xlu0 %v4394_v41, %s4105_s15 }
 0x479   :  { %884 = vrot.lane.b32.xlu1 %v4396_v42, %s4105_s15  ;;  %3402 = vmatprep.mubr.msk.f32.mxu0 %vm114_vm0, %v776_v44 }
 0x47a   :  { %3403 = vmatmul.mubr.msk.f32.vlgmr.msra.gmra.mrb[12].mxu0 %vm114_vm0, %v778_v43 }
 0x47b   :  { %v782_v46 = vpop.permute.xlu0 %781  ;;  %3655 = vmatpush3.bf16.msra.mxu0 %v4306_v52 }
 0x47c   :  { %v780_v47 = vpop.permute.xlu1 %779  ;;  %3657 = vmatprep.subr.bf16.mxu0 %v4323_v4 }
 0x47d   :  { %3405 = vmatprep.mubr.msk.f32.mxu0 %vm114_vm0, %v780_v47 }
 0x47e   :  { %3406 = vmatmul.mubr.msk.f32.gmra.mrb[14].mxu0 %vm114_vm0, %v782_v46 }
 0x47f   :  { %3659 = vmatpush3.bf16.msra.mxu0 %v4323_v4 }
 0x480   :  { %3669 = vmatprep.subr.bf16.mxu0 %v4306_v52 }
 0x4e5   :  { %v883_v48 = vpop.permute.xlu0 %882 }
 0x4e6   :  { %v881_v50 = vpop.permute.xlu1 %880 }
 0x4e7   :  { %3416 = vmatprep.mubr.msk.f32.mxu0 %vm114_vm0, %v881_v50 }
 0x4e8   :  { %3417 = vmatmul.mubr.msk.f32.vlgmr.msra.gmra.mrb[16].mxu0 %vm114_vm0, %v883_v48 }
 0x4e9   :  { %3671 = vmatpush3.bf16.msra.mxu0 %v4306_v52 }
 0x4ea   :  { %v887_v51 = vpop.permute.xlu0 %886  ;;  %3673 = vmatprep.subr.bf16.mxu0 %v4323_v4 }
 0x4eb   :  { %v885_v53 = vpop.permute.xlu1 %884 }
 0x4ec   :  { %3419 = vmatprep.mubr.msk.f32.mxu0 %vm114_vm0, %v885_v53 }
 0x4ed   :  { %3420 = vmatmul.mubr.msk.f32.gmra.mrb[18].mxu0 %vm114_vm0, %v887_v51 }
 0x4ee   :  { %3675 = vmatpush3.bf16.msra.mxu0 %v4323_v4 }
 0x4ef   :  { %3685 = vmatprep.subr.bf16.mxu0 %v4306_v52 }
 0x54d   :  { %v3404_v54 = vpop.f32.mrb[12].mxu0 }
 0x54e   :  { %v857_v55 = vpop.f32.mrb[13].mxu0  ;;  %v863_v7 = vadd.f32 %v3404_v54, %v4364_v28 }
 0x54f   :  { %v858_v10 = vadd.f32 %v4364_v28, %v857_v55 }
 0x551   :  { %v3407_v56 = vpop.f32.mrb[14].mxu0 }
 0x552   :  { %v867_v57 = vpop.f32.mrb[15].mxu0  ;;  %v873_v15 = vadd.f32 %v3407_v56, %v4364_v28 }
 0x553   :  { %v868_v16 = vadd.f32 %v4364_v28, %v867_v57 }
 0x5bb   :  { %v3418_v58 = vpop.f32.mrb[16].mxu0 }
 0x5bc   :  { %v1010_v61 = vadd.f32 %v3418_v58, %v4351_v19  ;;  %v962_v62 = vpop.f32.mrb[17].mxu0  ;;  %v982_v11 = vadd.f32 %v3418_v58, %v863_v7 }
 0x5bd   :  { %v1009_v63 = vadd.f32 %v962_v62, %v4351_v19  ;;  %v981_v12 = vadd.f32 %v962_v62, %v858_v10 }
 0x5be   :  { %1019 = vrot.lane.b32.xlu0 %v1010_v61, %s4104_s16  ;;  %v3128_v17 = vmul.f32 -1.442695, %v982_v11 }
 0x5bf   :  { %1017 = vrot.lane.b32.xlu1 %v1009_v63, %s4104_s16  ;;  %v3127_v18 = vmul.f32 -1.442695, %v981_v12 }
 0x5c0   :  { %v3421_v0 = vpop.f32.mrb[18].mxu0  ;;  %3809 = vpow2.f32 %v3128_v17 }
 0x5c1   :  { %v1012_v1 = vadd.f32 %v3421_v0, %v4351_v19  ;;  %v972_v5 = vpop.f32.mrb[19].mxu0  ;;  %v984_v20 = vadd.f32 %v3421_v0, %v873_v15  ;;  %3811 = vpow2.f32 %v3127_v18 }
 0x5c2   :  { %v1011_v6 = vadd.f32 %v972_v5, %v4351_v19  ;;  %v983_v21 = vadd.f32 %v972_v5, %v868_v16 }
 0x5c3   :  { %1023 = vrot.lane.b32.xlu0 %v1012_v1, %s4104_s16  ;;  %v3130_v23 = vmul.f32 -1.442695, %v984_v20 }
 0x5c4   :  { %1021 = vrot.lane.b32.xlu1 %v1011_v6, %s4104_s16  ;;  %v3129_v24 = vmul.f32 -1.442695, %v983_v21 }
 0x5c5   :  { %3813 = vpow2.f32 %v3130_v23 }
 0x5c6   :  { %3815 = vpow2.f32 %v3129_v24 }
 0x5ca   :  { %v3810_v22 = vpop.eup %3809 }
 0x5cb   :  { %v3812_v25 = vpop.eup %3811  ;;  %v998_v26 = vadd.f32 1.0, %v3810_v22 }
 0x5cc   :  { %v997_v27 = vadd.f32 1.0, %v3812_v25 }
 0x5cd   :  { %3817 = vrcp.f32 %v998_v26 }
 0x5ce   :  { %3819 = vrcp.f32 %v997_v27 }
 0x5cf   :  { %v3814_v29 = vpop.eup %3813 }
 0x5d0   :  { %v3816_v30 = vpop.eup %3815  ;;  %v1000_v33 = vadd.f32 1.0, %v3814_v29 }
 0x5d1   :  { %v999_v34 = vadd.f32 1.0, %v3816_v30 }
 0x5d2   :  { %3821 = vrcp.f32 %v1000_v33 }
 0x5d3   :  { %3823 = vrcp.f32 %v999_v34 }
 0x5d7   :  { %v3818_v35 = vpop.eup %3817 }
 0x5d8   :  { %v3820_v37 = vpop.eup %3819  ;;  %v1058_v5 = vsub.f32 1.0, %v3818_v35 }
 0x5dc   :  { %v3822_v43 = vpop.eup %3821 }
 0x5dd   :  { %v3824_v46 = vpop.eup %3823  ;;  %v1060_v20 = vsub.f32 1.0, %v3822_v43  ;;  %v1084_v24 = vmul.f32 %v3822_v43, %v4394_v41 }
 0x5de   :  { %v1059_v23 = vsub.f32 1.0, %v3824_v46 }
 0x630   :  { %v1020_v36 = vpop.permute.xlu0 %1019 }
 0x631   :  { %v1030_v38 = vmul.f32 %v3818_v35, %v1020_v36  ;;  %v1018_v39 = vpop.permute.xlu1 %1017 }
 0x632   :  { %v1029_v40 = vmul.f32 %v3820_v37, %v1018_v39 }
 0x633   :  { %1039 = vrot.lane.b32.xlu0 %v1030_v38, %s4104_s16 }
 0x634   :  { %1037 = vrot.lane.b32.xlu1 %v1029_v40, %s4104_s16 }
 0x635   :  { %v1024_v44 = vpop.permute.xlu0 %1023 }
 0x636   :  { %v1032_v47 = vmul.f32 %v3822_v43, %v1024_v44  ;;  %v1022_v48 = vpop.permute.xlu1 %1021 }
 0x637   :  { %v1031_v50 = vmul.f32 %v3824_v46, %v1022_v48 }
 0x638   :  { %1043 = vrot.lane.b32.xlu0 %v1032_v47, %s4104_s16 }
 0x639   :  { %1041 = vrot.lane.b32.xlu1 %v1031_v50, %s4104_s16 }
 0x6a5   :  { %v1040_v51 = vpop.permute.xlu0 %1039 }
 0x6a6   :  { %v1050_v53 = vadd.f32 %v1040_v51, %v863_v7  ;;  %v1038_v54 = vpop.permute.xlu1 %1037  ;;  %v1057_v7 = vsub.f32 1.0, %v3820_v37 }
 0x6a7   :  { %v1049_v55 = vadd.f32 %v1038_v54, %v858_v10  ;;  %v1082_v10 = vmul.f32 %v3818_v35, %v4386_v31  ;;  %v1083_v31 = vmul.f32 %v3824_v46, %v4396_v42 }
 0x6a8   :  { %3825 = vtanh.f32 %v1050_v53 }
 0x6a9   :  { %3827 = vtanh.f32 %v1049_v55 }
 0x6aa   :  { %v1044_v56 = vpop.permute.xlu0 %1043 }
 0x6ab   :  { %v1052_v57 = vadd.f32 %v1044_v56, %v873_v15  ;;  %v1042_v58 = vpop.permute.xlu1 %1041  ;;  %v1081_v15 = vmul.f32 %v3820_v37, %v4388_v32 }
 0x6ac   :  { %v1051_v61 = vadd.f32 %v1042_v58, %v868_v16 }
 0x6ad   :  { %3829 = vtanh.f32 %v1052_v57 }
 0x6ae   :  { %3831 = vtanh.f32 %v1051_v61 }
 0x6b2   :  { %v3826_v62 = vpop.eup %3825 }
 0x6b3   :  { %v3828_v63 = vpop.eup %3827  ;;  %1067 = vrot.lane.b32.xlu0 %v3826_v62, %s4105_s15 }
 0x6b4   :  { %1065 = vrot.lane.b32.xlu1 %v3828_v63, %s4105_s15 }
 0x6b7   :  { %v3830_v0 = vpop.eup %3829 }
 0x6b8   :  { %v3832_v1 = vpop.eup %3831  ;;  %1071 = vrot.lane.b32.xlu0 %v3830_v0, %s4105_s15 }
 0x6b9   :  { %1069 = vrot.lane.b32.xlu1 %v3832_v1, %s4105_s15 }
 0x725   :  { %v1068_v6 = vpop.permute.xlu0 %1067 }
 0x726   :  { %v1078_v11 = vmul.f32 %v1068_v6, %v1058_v5  ;;  %v1066_v12 = vpop.permute.xlu1 %1065 }
 0x727   :  { %v1077_v16 = vmul.f32 %v1066_v12, %v1057_v7 }
 0x728   :  { %v4440_v17 = vadd.f32 %v1082_v10, %v1078_v11 }
 0x729   :  { %v4442_v18 = vadd.f32 %v1081_v15, %v1077_v16 }
 0x72a   :  { %v1072_v21 = vpop.permute.xlu0 %1071  ;;  %1196 = vrot.lane.b32.xlu0 %v4440_v17, %s4105_s15 }
 0x72b   :  { %v1080_v22 = vmul.f32 %v1072_v21, %v1060_v20  ;;  %v1070_v25 = vpop.permute.xlu1 %1069  ;;  %1194 = vrot.lane.b32.xlu1 %v4442_v18, %s4105_s15 }
 0x72c   :  { %v1079_v32 = vmul.f32 %v1070_v25, %v1059_v23 }
 0x72d   :  { %v4450_v26 = vadd.f32 %v1084_v24, %v1080_v22 }
 0x72e   :  { %v4452_v27 = vadd.f32 %v1083_v31, %v1079_v32 }
 0x72f   :  { %1200 = vrot.lane.b32.xlu0 %v4450_v26, %s4105_s15 }
 0x730   :  { %1198 = vrot.lane.b32.xlu1 %v4452_v27, %s4105_s15 }
 0x733   :  { %1091 = vrot.lane.b32.xlu0 %v4321_v3, %s4104_s16 }
 0x734   :  { %1089 = vrot.lane.b32.xlu1 %v4315_v60, %s4104_s16 }
 0x737   :  { %1095 = vrot.lane.b32.xlu0 %v4338_v14, %s4104_s16 }
 0x738   :  { %1093 = vrot.lane.b32.xlu1 %v4330_v9, %s4104_s16 }
 0x79c   :  { %v1197_v41 = vpop.permute.xlu0 %1196 }
 0x79d   :  { %v1195_v42 = vpop.permute.xlu1 %1194 }
 0x79e   :  { %3444 = vmatprep.mubr.msk.f32.mxu0 %vm114_vm0, %v1195_v42 }
 0x79f   :  { %3445 = vmatmul.mubr.msk.f32.vlgmr.msra.gmra.mrb[20].mxu0 %vm114_vm0, %v1197_v41 }
 0x7a0   :  { %3687 = vmatpush3.bf16.msra.mxu0 %v4306_v52 }
 0x7a1   :  { %v1201_v29 = vpop.permute.xlu0 %1200  ;;  %3689 = vmatprep.subr.bf16.mxu0 %v4323_v4 }
 0x7a2   :  { %v1199_v30 = vpop.permute.xlu1 %1198 }
 0x7a3   :  { %3447 = vmatprep.mubr.msk.f32.mxu0 %vm114_vm0, %v1199_v30 }
 0x7a4   :  { %3448 = vmatmul.mubr.msk.f32.gmra.mrb[22].mxu0 %vm114_vm0, %v1201_v29 }
 0x7a5   :  { %v1092_v33 = vpop.permute.xlu0 %1091  ;;  %3691 = vmatpush3.bf16.msra.mxu0 %v4323_v4 }
 0x7a6   :  { %v1090_v34 = vpop.permute.xlu1 %1089  ;;  %3701 = vmatprep.subr.bf16.mxu0 %v4306_v52 }
 0x7a7   :  { %3430 = vmatprep.mubr.msk.f32.mxu1 %vm114_vm0, %v1090_v34 }
 0x7a8   :  { %3431 = vmatmul.mubr.msk.f32.vlgmr.msra.gmra.mrb[8].mxu1 %vm114_vm0, %v1092_v33 }
 0x7a9   :  { %3679 = vmatpush3.bf16.msra.mxu1 %v4293_v45  ;;  %v1096_v36 = vpop.permute.xlu0 %1095 }
 0x7aa   :  { %v1094_v35 = vpop.permute.xlu1 %1093  ;;  %3681 = vmatprep.subr.bf16.mxu1 %v4299_v49 }
 0x7ab   :  { %3433 = vmatprep.mubr.msk.f32.mxu1 %vm114_vm0, %v1094_v35 }
 0x7ac   :  { %3434 = vmatmul.mubr.msk.f32.gmra.mrb[10].mxu1 %vm114_vm0, %v1096_v36 }
 0x7ad   :  { %3683 = vmatpush3.bf16.msra.mxu1 %v4299_v49 }
 0x7ae   :  { %3693 = vmatprep.subr.bf16.mxu1 %v4293_v45 }
 0x872   :  { %v3446_v37 = vpop.f32.mrb[20].mxu0 }
 0x873   :  { %v1324_v38 = vadd.f32 %v3446_v37, %v4351_v19  ;;  %v1276_v39 = vpop.f32.mrb[21].mxu0 }
 0x874   :  { %v1323_v40 = vadd.f32 %v1276_v39, %v4351_v19 }
 0x875   :  { %1333 = vrot.lane.b32.xlu0 %v1324_v38, %s4104_s16 }
 0x876   :  { %1331 = vrot.lane.b32.xlu1 %v1323_v40, %s4104_s16 }
 0x877   :  { %v3449_v43 = vpop.f32.mrb[22].mxu0 }
 0x878   :  { %v1326_v44 = vadd.f32 %v3449_v43, %v4351_v19  ;;  %v1286_v46 = vpop.f32.mrb[23].mxu0 }
 0x879   :  { %v1325_v47 = vadd.f32 %v1286_v46, %v4351_v19 }
 0x87a   :  { %1337 = vrot.lane.b32.xlu0 %v1326_v44, %s4104_s16 }
 0x87b   :  { %1335 = vrot.lane.b32.xlu1 %v1325_v47, %s4104_s16  ;;  %v3432_v48 = vpop.f32.mrb[8].mxu1 }
 0x87c   :  { %v1171_v50 = vpop.f32.mrb[9].mxu1  ;;  %v1177_v54 = vadd.f32 %v3432_v48, %v4364_v28 }
 0x87d   :  { %v1172_v55 = vadd.f32 %v4364_v28, %v1171_v50 }
 0x87e   :  { %v1296_v56 = vadd.f32 %v3446_v37, %v1177_v54 }
 0x87f   :  { %v3435_v51 = vpop.f32.mrb[10].mxu1  ;;  %v1295_v57 = vadd.f32 %v1276_v39, %v1172_v55 }
 0x880   :  { %v1181_v53 = vpop.f32.mrb[11].mxu1  ;;  %v1187_v58 = vadd.f32 %v3435_v51, %v4364_v28  ;;  %v3140_v62 = vmul.f32 -1.442695, %v1296_v56 }
 0x881   :  { %v1182_v61 = vadd.f32 %v4364_v28, %v1181_v53  ;;  %v3139_v63 = vmul.f32 -1.442695, %v1295_v57 }
 0x882   :  { %v1298_v0 = vadd.f32 %v3449_v43, %v1187_v58  ;;  %3833 = vpow2.f32 %v3140_v62 }
 0x883   :  { %v1297_v1 = vadd.f32 %v1286_v46, %v1182_v61  ;;  %3835 = vpow2.f32 %v3139_v63 }
 0x884   :  { %v3142_v5 = vmul.f32 -1.442695, %v1298_v0 }
 0x885   :  { %v3141_v6 = vmul.f32 -1.442695, %v1297_v1 }
 0x886   :  { %3837 = vpow2.f32 %v3142_v5 }
 0x887   :  { %3839 = vpow2.f32 %v3141_v6 }
 0x88c   :  { %v3834_v7 = vpop.eup %3833 }
 0x88d   :  { %v3836_v10 = vpop.eup %3835  ;;  %v1312_v11 = vadd.f32 1.0, %v3834_v7 }
 0x88e   :  { %v1311_v12 = vadd.f32 1.0, %v3836_v10 }
 0x88f   :  { %3841 = vrcp.f32 %v1312_v11 }
 0x890   :  { %v3838_v15 = vpop.eup %3837  ;;  %3843 = vrcp.f32 %v1311_v12 }
 0x891   :  { %v3840_v16 = vpop.eup %3839  ;;  %v1314_v20 = vadd.f32 1.0, %v3838_v15 }
 0x892   :  { %v1313_v21 = vadd.f32 1.0, %v3840_v16  ;;  %v4543_v16 = vmax.f32 %v4313_v59, 0.0  ;;  %v4563_v59 = vmax.f32 %v4335_v13, 0.0 }
 0x893   :  { %3845 = vrcp.f32 %v1314_v20 }
 0x894   :  { %3847 = vrcp.f32 %v1313_v21  ;;  %v4551_v21 = vmax.f32 %v4319_v2, 0.0 }
 0x899   :  { %v3842_v23 = vpop.eup %3841 }
 0x89a   :  { %v3844_v22 = vpop.eup %3843  ;;  %v1372_v51 = vsub.f32 1.0, %v3842_v23 }
 0x89d   :  { %v3846_v41 = vpop.eup %3845 }
 0x89e   :  { %v3848_v29 = vpop.eup %3847  ;;  %v1374_v0 = vsub.f32 1.0, %v3846_v41  ;;  %v1398_v6 = vmul.f32 %v3846_v41, %v4450_v26 }
 0x89f   :  { %v1373_v5 = vsub.f32 1.0, %v3848_v29 }
 0x8e7   :  { %v1334_v24 = vpop.permute.xlu0 %1333 }
 0x8e8   :  { %v1344_v25 = vmul.f32 %v3842_v23, %v1334_v24  ;;  %v1332_v31 = vpop.permute.xlu1 %1331 }
 0x8e9   :  { %v1343_v32 = vmul.f32 %v3844_v22, %v1332_v31 }
 0x8ea   :  { %1353 = vrot.lane.b32.xlu0 %v1344_v25, %s4104_s16 }
 0x8eb   :  { %1351 = vrot.lane.b32.xlu1 %v1343_v32, %s4104_s16 }
 0x8ec   :  { %v1338_v42 = vpop.permute.xlu0 %1337 }
 0x8ed   :  { %v1346_v30 = vmul.f32 %v3846_v41, %v1338_v42  ;;  %v1336_v33 = vpop.permute.xlu1 %1335 }
 0x8ee   :  { %v1345_v34 = vmul.f32 %v3848_v29, %v1336_v33 }
 0x8ef   :  { %1357 = vrot.lane.b32.xlu0 %v1346_v30, %s4104_s16 }
 0x8f0   :  { %1355 = vrot.lane.b32.xlu1 %v1345_v34, %s4104_s16 }
 0x95c   :  { %v1354_v35 = vpop.permute.xlu0 %1353 }
 0x95d   :  { %v1364_v36 = vadd.f32 %v1354_v35, %v1177_v54  ;;  %v1352_v37 = vpop.permute.xlu1 %1351  ;;  %v1371_v54 = vsub.f32 1.0, %v3844_v22 }
 0x95e   :  { %v1363_v38 = vadd.f32 %v1352_v37, %v1172_v55  ;;  %v1396_v55 = vmul.f32 %v3842_v23, %v4440_v17  ;;  %v1397_v17 = vmul.f32 %v3848_v29, %v4452_v27  ;;  %v4555_v23 = vmax.f32 %v4327_v8, 0.0 }
 0x95f   :  { %3849 = vtanh.f32 %v1364_v36 }
 0x960   :  { %3851 = vtanh.f32 %v1363_v38 }
 0x961   :  { %v1358_v39 = vpop.permute.xlu0 %1357 }
 0x962   :  { %v1366_v40 = vadd.f32 %v1358_v39, %v1187_v58  ;;  %v1356_v43 = vpop.permute.xlu1 %1355  ;;  %v1395_v58 = vmul.f32 %v3844_v22, %v4442_v18 }
 0x963   :  { %v1365_v44 = vadd.f32 %v1356_v43, %v1182_v61 }
 0x964   :  { %3853 = vtanh.f32 %v1366_v40 }
 0x965   :  { %3855 = vtanh.f32 %v1365_v44 }
 0x969   :  { %v3850_v46 = vpop.eup %3849 }
 0x96a   :  { %v3852_v47 = vpop.eup %3851  ;;  %1381 = vrot.lane.b32.xlu0 %v3850_v46, %s4105_s15 }
 0x96b   :  { %1379 = vrot.lane.b32.xlu1 %v3852_v47, %s4105_s15 }
 0x96e   :  { %v3854_v48 = vpop.eup %3853 }
 0x96f   :  { %v3856_v50 = vpop.eup %3855  ;;  %1385 = vrot.lane.b32.xlu0 %v3854_v48, %s4105_s15 }
 0x970   :  { %1383 = vrot.lane.b32.xlu1 %v3856_v50, %s4105_s15 }
 0x9dc   :  { %v1382_v53 = vpop.permute.xlu0 %1381 }
 0x9dd   :  { %v1392_v56 = vmul.f32 %v1382_v53, %v1372_v51  ;;  %v1380_v57 = vpop.permute.xlu1 %1379 }
 0x9de   :  { %v1391_v61 = vmul.f32 %v1380_v57, %v1371_v54 }
 0x9df   :  { %v4504_v62 = vadd.f32 %v1396_v55, %v1392_v56 }
 0x9e0   :  { %v4506_v63 = vadd.f32 %v1395_v58, %v1391_v61 }
 0x9e1   :  { %v1386_v1 = vpop.permute.xlu0 %1385  ;;  %1510 = vrot.lane.b32.xlu0 %v4504_v62, %s4105_s15 }
 0x9e2   :  { %v1394_v7 = vmul.f32 %v1386_v1, %v1374_v0  ;;  %v1384_v10 = vpop.permute.xlu1 %1383  ;;  %1508 = vrot.lane.b32.xlu1 %v4506_v63, %s4105_s15 }
 0x9e3   :  { %v1393_v18 = vmul.f32 %v1384_v10, %v1373_v5 }
 0x9e4   :  { %v4514_v11 = vadd.f32 %v1398_v6, %v1394_v7 }
 0x9e5   :  { %v4516_v12 = vadd.f32 %v1397_v17, %v1393_v18 }
 0x9e6   :  { %1514 = vrot.lane.b32.xlu0 %v4514_v11, %s4105_s15 }
 0x9e7   :  { %1512 = vrot.lane.b32.xlu1 %v4516_v12, %s4105_s15 }
 0x9ea   :  { %1405 = vrot.lane.b32.xlu0 %v4321_v3, %s4106_s17 }
 0x9eb   :  { %1403 = vrot.lane.b32.xlu1 %v4315_v60, %s4106_s17 }
 0x9ee   :  { %1409 = vrot.lane.b32.xlu0 %v4338_v14, %s4106_s17 }
 0x9ef   :  { %1407 = vrot.lane.b32.xlu1 %v4330_v9, %s4106_s17 }
 0xa53   :  { %v1511_v26 = vpop.permute.xlu0 %1510 }
 0xa54   :  { %v1509_v27 = vpop.permute.xlu1 %1508 }
 0xa55   :  { %3472 = vmatprep.mubr.msk.f32.mxu0 %vm114_vm0, %v1509_v27 }
 0xa56   :  { %3473 = vmatmul.mubr.msk.f32.vlgmr.msra.gmra.mrb[24].mxu0 %vm114_vm0, %v1511_v26 }
 0xa57   :  { %3703 = vmatpush3.bf16.msra.mxu0 %v4306_v52 }
 0xa58   :  { %v1515_v15 = vpop.permute.xlu0 %1514  ;;  %3705 = vmatprep.subr.bf16.mxu0 %v4323_v4 }
 0xa59   :  { %v1513_v3 = vpop.permute.xlu1 %1512 }
 0xa5a   :  { %3475 = vmatprep.mubr.msk.f32.mxu0 %vm114_vm0, %v1513_v3 }
 0xa5b   :  { %3476 = vmatmul.mubr.msk.f32.gmra.mrb[26].mxu0 %vm114_vm0, %v1515_v15 }
 0xa5c   :  { %v1406_v60 = vpop.permute.xlu0 %1405  ;;  %3707 = vmatpush3.bf16.msra.mxu0 %v4323_v4 }
 0xa5d   :  { %v1404_v9 = vpop.permute.xlu1 %1403  ;;  %3717 = vmatprep.subr.bf16.mxu0 %v4306_v52 }
 0xa5e   :  { %3458 = vmatprep.mubr.msk.f32.mxu1 %vm114_vm0, %v1404_v9 }
 0xa5f   :  { %3459 = vmatmul.mubr.msk.f32.vlgmr.msra.gmra.mrb[12].mxu1 %vm114_vm0, %v1406_v60 }
 0xa60   :  { %3695 = vmatpush3.bf16.msra.mxu1 %v4293_v45  ;;  %v1410_v20 = vpop.permute.xlu0 %1409 }
 0xa61   :  { %v1408_v14 = vpop.permute.xlu1 %1407  ;;  %3697 = vmatprep.subr.bf16.mxu1 %v4299_v49 }
 0xa62   :  { %3461 = vmatprep.mubr.msk.f32.mxu1 %vm114_vm0, %v1408_v14 }
 0xa63   :  { %3462 = vmatmul.mubr.msk.f32.gmra.mrb[14].mxu1 %vm114_vm0, %v1410_v20 }
 0xa64   :  { %3699 = vmatpush3.bf16.msra.mxu1 %v4299_v49  ;;  %3486 = vmatprep.mubr.msk.f32.mxu1 %vm114_vm0, %v4543_v16 }
 0xa65   :  { %3709 = vmatprep.subr.bf16.mxu1 %v4293_v45 }
 0xa67   :  { %3487 = vmatmul.mubr.msk.f32.vlgmr.msra.gmra.mrb[16].mxu1 %vm114_vm0, %v4551_v21 }
 0xa68   :  { %3489 = vmatprep.mubr.msk.f32.mxu1 %vm114_vm0, %v4555_v23  ;;  %3711 = vmatpush3.bf16.msra.mxu1 %v4293_v45 }
 0xa69   :  { %3713 = vmatprep.subr.bf16.mxu1 %v4299_v49 }
 0xa6b   :  { %3490 = vmatmul.mubr.msk.f32.gmra.mrb[18].mxu1 %vm114_vm0, %v4563_v59 }
 0xa6c   :  { %3715 = vmatpush3.bf16.msra.mxu1 %v4299_v49 }
 0xa6d   :  { %3725 = vmatprep.subr.bf16.mxu1 %v4293_v45 }
 0xb29   :  { %v3474_v2 = vpop.f32.mrb[24].mxu0 }
 0xb2a   :  { %v1638_v8 = vadd.f32 %v3474_v2, %v4351_v19  ;;  %v1590_v24 = vpop.f32.mrb[25].mxu0 }
 0xb2b   :  { %v1637_v22 = vadd.f32 %v1590_v24, %v4351_v19 }
 0xb2c   :  { %1647 = vrot.lane.b32.xlu0 %v1638_v8, %s4104_s16 }
 0xb2d   :  { %1645 = vrot.lane.b32.xlu1 %v1637_v22, %s4104_s16 }
 0xb2e   :  { %v3477_v13 = vpop.f32.mrb[26].mxu0 }
 0xb2f   :  { %v1640_v25 = vadd.f32 %v3477_v13, %v4351_v19  ;;  %v1600_v31 = vpop.f32.mrb[27].mxu0 }
 0xb30   :  { %v1639_v32 = vadd.f32 %v1600_v31, %v4351_v19 }
 0xb31   :  { %1651 = vrot.lane.b32.xlu0 %v1640_v25, %s4104_s16 }
 0xb32   :  { %1649 = vrot.lane.b32.xlu1 %v1639_v32, %s4104_s16  ;;  %v3460_v41 = vpop.f32.mrb[12].mxu1 }
 0xb33   :  { %v1485_v42 = vpop.f32.mrb[13].mxu1  ;;  %v1491_v37 = vadd.f32 %v3460_v41, %v4364_v28 }
 0xb34   :  { %v1486_v38 = vadd.f32 %v4364_v28, %v1485_v42 }
 0xb35   :  { %v1610_v39 = vadd.f32 %v3474_v2, %v1491_v37 }
 0xb36   :  { %v3463_v29 = vpop.f32.mrb[14].mxu1  ;;  %v1609_v40 = vadd.f32 %v1590_v24, %v1486_v38 }
 0xb37   :  { %v1495_v30 = vpop.f32.mrb[15].mxu1  ;;  %v1501_v43 = vadd.f32 %v3463_v29, %v4364_v28  ;;  %v3152_v46 = vmul.f32 -1.442695, %v1610_v39 }
 0xb38   :  { %v1496_v44 = vadd.f32 %v4364_v28, %v1495_v30  ;;  %v3151_v47 = vmul.f32 -1.442695, %v1609_v40 }
 0xb39   :  { %v1612_v48 = vadd.f32 %v3477_v13, %v1501_v43  ;;  %3857 = vpow2.f32 %v3152_v46 }
 0xb3a   :  { %v4578_v33 = vpop.f32.mrb[16].mxu1  ;;  %v1611_v50 = vadd.f32 %v1600_v31, %v1496_v44  ;;  %3859 = vpow2.f32 %v3151_v47 }
 0xb3b   :  { %v4580_v34 = vpop.f32.mrb[17].mxu1  ;;  %v3154_v51 = vmul.f32 -1.442695, %v1612_v48 }
 0xb3c   :  { %v3153_v53 = vmul.f32 -1.442695, %v1611_v50 }
 0xb3d   :  { %3861 = vpow2.f32 %v3154_v51 }
 0xb3e   :  { %v4582_v35 = vpop.f32.mrb[18].mxu1  ;;  %3863 = vpow2.f32 %v3153_v53 }
 0xb3f   :  { %v4584_v36 = vpop.f32.mrb[19].mxu1 }
 0xb43   :  { %v3858_v54 = vpop.eup %3857 }
 0xb44   :  { %v3860_v55 = vpop.eup %3859  ;;  %v1626_v56 = vadd.f32 1.0, %v3858_v54 }
 0xb45   :  { %v1625_v57 = vadd.f32 1.0, %v3860_v55 }
 0xb46   :  { %3865 = vrcp.f32 %v1626_v56 }
 0xb47   :  { %v3862_v58 = vpop.eup %3861  ;;  %3867 = vrcp.f32 %v1625_v57 }
 0xb48   :  { %v3864_v61 = vpop.eup %3863  ;;  %v1628_v0 = vadd.f32 1.0, %v3862_v58 }
 0xb49   :  { %v1627_v28 = vadd.f32 1.0, %v3864_v61 }
 0xb4a   :  { %3869 = vrcp.f32 %v1628_v0 }
 0xb4b   :  { %3871 = vrcp.f32 %v1627_v28 }
 0xb50   :  { %v3866_v1 = vpop.eup %3865 }
 0xb51   :  { %v3868_v6 = vpop.eup %3867  ;;  %v1686_v42 = vsub.f32 1.0, %v3866_v1 }
 0xb52   :  { %v1685_v30 = vsub.f32 1.0, %v3868_v6  ;;  %v1709_v40 = vmul.f32 %v3868_v6, %v4506_v63 }
 0xb54   :  { %v3870_v18 = vpop.eup %3869 }
 0xb55   :  { %v3872_v27 = vpop.eup %3871  ;;  %v1688_v47 = vsub.f32 1.0, %v3870_v18  ;;  %v1712_v51 = vmul.f32 %v3870_v18, %v4514_v11 }
 0xb56   :  { %v1687_v50 = vsub.f32 1.0, %v3872_v27 }
 0xb9e   :  { %v1648_v5 = vpop.permute.xlu0 %1647 }
 0xb9f   :  { %v1658_v7 = vmul.f32 %v3866_v1, %v1648_v5  ;;  %v1646_v10 = vpop.permute.xlu1 %1645 }
 0xba0   :  { %v1657_v17 = vmul.f32 %v3868_v6, %v1646_v10 }
 0xba1   :  { %1667 = vrot.lane.b32.xlu0 %v1658_v7, %s4104_s16 }
 0xba2   :  { %1665 = vrot.lane.b32.xlu1 %v1657_v17, %s4104_s16  ;;  %v4637_v17 = vld [vmem:[%s4883_s7] ss:$0 sm:$0xff] }
 0xba3   :  { %v1652_v26 = vpop.permute.xlu0 %1651 }
 0xba4   :  { %v1660_v15 = vmul.f32 %v3870_v18, %v1652_v26  ;;  %v1650_v3 = vpop.permute.xlu1 %1649  ;;  %v1801_v18 = vadd.f32 %v4637_v17, %v4578_v33  ;;  %v1796_v26 = vadd.f32 %v4637_v17, %v4580_v34 }
 0xba5   :  { %v1659_v60 = vmul.f32 %v3872_v27, %v1650_v3  ;;  %v1811_v3 = vadd.f32 %v4637_v17, %v4582_v35 }
 0xba6   :  { %1671 = vrot.lane.b32.xlu0 %v1660_v15, %s4104_s16 }
 0xba7   :  { %1669 = vrot.lane.b32.xlu1 %v1659_v60, %s4104_s16  ;;  %v1806_v60 = vadd.f32 %v4637_v17, %v4584_v36 }
 0xc13   :  { %v1668_v9 = vpop.permute.xlu0 %1667 }
 0xc14   :  { %v1678_v14 = vadd.f32 %v1668_v9, %v1491_v37  ;;  %v1666_v20 = vpop.permute.xlu1 %1665  ;;  %v1710_v37 = vmul.f32 %v3866_v1, %v4504_v62  ;;  %v1711_v62 = vmul.f32 %v3872_v27, %v4516_v12 }
 0xc15   :  { %v1677_v2 = vadd.f32 %v1666_v20, %v1486_v38 }
 0xc16   :  { %3873 = vtanh.f32 %v1678_v14 }
 0xc17   :  { %3875 = vtanh.f32 %v1677_v2 }
 0xc18   :  { %v1672_v8 = vpop.permute.xlu0 %1671 }
 0xc19   :  { %v1680_v24 = vadd.f32 %v1672_v8, %v1501_v43  ;;  %v1670_v22 = vpop.permute.xlu1 %1669 }
 0xc1a   :  { %v1679_v13 = vadd.f32 %v1670_v22, %v1496_v44 }
 0xc1b   :  { %3877 = vtanh.f32 %v1680_v24 }
 0xc1c   :  { %3879 = vtanh.f32 %v1679_v13 }
 0xc20   :  { %v3874_v25 = vpop.eup %3873 }
 0xc21   :  { %v3876_v31 = vpop.eup %3875  ;;  %1695 = vrot.lane.b32.xlu0 %v3874_v25, %s4105_s15 }
 0xc22   :  { %1693 = vrot.lane.b32.xlu1 %v3876_v31, %s4105_s15 }
 0xc25   :  { %v3878_v32 = vpop.eup %3877 }
 0xc26   :  { %v3880_v41 = vpop.eup %3879  ;;  %1699 = vrot.lane.b32.xlu0 %v3878_v32, %s4105_s15 }
 0xc27   :  { %1697 = vrot.lane.b32.xlu1 %v3880_v41, %s4105_s15 }
 0xc93   :  { %v1696_v29 = vpop.permute.xlu0 %1695 }
 0xc94   :  { %v1706_v38 = vmul.f32 %v1696_v29, %v1686_v42  ;;  %v1694_v39 = vpop.permute.xlu1 %1693 }
 0xc95   :  { %v1705_v43 = vmul.f32 %v1694_v39, %v1685_v30 }
 0xc96   :  { %v4600_v44 = vadd.f32 %v1710_v37, %v1706_v38 }
 0xc97   :  { %v4602_v46 = vadd.f32 %v1709_v40, %v1705_v43 }
 0xc98   :  { %v1700_v48 = vpop.permute.xlu0 %1699  ;;  %1820 = vrot.lane.b32.xlu0 %v4600_v44, %s4105_s15 }
 0xc99   :  { %v1708_v53 = vmul.f32 %v1700_v48, %v1688_v47  ;;  %v1698_v54 = vpop.permute.xlu1 %1697  ;;  %1818 = vrot.lane.b32.xlu1 %v4602_v46, %s4105_s15 }
 0xc9a   :  { %v1707_v63 = vmul.f32 %v1698_v54, %v1687_v50 }
 0xc9b   :  { %v4610_v55 = vadd.f32 %v1712_v51, %v1708_v53 }
 0xc9c   :  { %v4612_v56 = vadd.f32 %v1711_v62, %v1707_v63 }
 0xc9d   :  { %1824 = vrot.lane.b32.xlu0 %v4610_v55, %s4105_s15 }
 0xc9e   :  { %1822 = vrot.lane.b32.xlu1 %v4612_v56, %s4105_s15 }
 0xd0a   :  { %v1821_v57 = vpop.permute.xlu0 %1820 }
 0xd0b   :  { %v1819_v11 = vpop.permute.xlu1 %1818 }
 0xd0c   :  { %3500 = vmatprep.mubr.msk.f32.mxu0 %vm114_vm0, %v1819_v11 }
 0xd0d   :  { %3501 = vmatmul.mubr.msk.f32.vlgmr.msra.gmra.mrb[28].mxu0 %vm114_vm0, %v1821_v57 }
 0xd0e   :  { %3719 = vmatpush3.bf16.msra.mxu0 %v4306_v52 }
 0xd0f   :  { %3721 = vmatprep.subr.bf16.mxu0 %v4323_v4  ;;  %v1825_v58 = vpop.permute.xlu0 %1824 }
 0xd10   :  { %v1823_v12 = vpop.permute.xlu1 %1822 }
 0xd11   :  { %3503 = vmatprep.mubr.msk.f32.mxu0 %vm114_vm0, %v1823_v12 }
 0xd12   :  { %3504 = vmatmul.mubr.msk.f32.gmra.mrb[30].mxu0 %vm114_vm0, %v1825_v58 }
 0xd13   :  { %3723 = vmatpush3.bf16.msra.mxu0 %v4323_v4 }
 0xd14   :  { %3733 = vmatprep.subr.bf16.mxu0 %v4306_v52 }
 0xde0   :  { %v3502_v61 = vpop.f32.mrb[28].mxu0 }
 0xde1   :  { %v1948_v0 = vadd.f32 %v3502_v61, %v4351_v19  ;;  %v1900_v28 = vpop.f32.mrb[29].mxu0  ;;  %v1920_v27 = vadd.f32 %v3502_v61, %v1801_v18 }
 0xde2   :  { %v1947_v1 = vadd.f32 %v1900_v28, %v4351_v19  ;;  %v1919_v15 = vadd.f32 %v1900_v28, %v1796_v26 }
 0xde3   :  { %1957 = vrot.lane.b32.xlu0 %v1948_v0, %s4104_s16  ;;  %v3164_v9 = vmul.f32 -1.442695, %v1920_v27 }
 0xde4   :  { %1955 = vrot.lane.b32.xlu1 %v1947_v1, %s4104_s16  ;;  %v3163_v14 = vmul.f32 -1.442695, %v1919_v15 }
 0xde5   :  { %v3505_v5 = vpop.f32.mrb[30].mxu0  ;;  %3881 = vpow2.f32 %v3164_v9 }
 0xde6   :  { %v1950_v6 = vadd.f32 %v3505_v5, %v4351_v19  ;;  %v1910_v7 = vpop.f32.mrb[31].mxu0  ;;  %v1922_v20 = vadd.f32 %v3505_v5, %v1811_v3  ;;  %3883 = vpow2.f32 %v3163_v14 }
 0xde7   :  { %v1949_v10 = vadd.f32 %v1910_v7, %v4351_v19  ;;  %v1921_v2 = vadd.f32 %v1910_v7, %v1806_v60 }
 0xde8   :  { %1961 = vrot.lane.b32.xlu0 %v1950_v6, %s4104_s16  ;;  %v3166_v8 = vmul.f32 -1.442695, %v1922_v20 }
 0xde9   :  { %1959 = vrot.lane.b32.xlu1 %v1949_v10, %s4104_s16  ;;  %v3165_v24 = vmul.f32 -1.442695, %v1921_v2 }
 0xdea   :  { %3885 = vpow2.f32 %v3166_v8 }
 0xdeb   :  { %3887 = vpow2.f32 %v3165_v24 }
 0xdef   :  { %v3882_v33 = vpop.eup %3881 }
 0xdf0   :  { %v3884_v34 = vpop.eup %3883  ;;  %v1936_v22 = vadd.f32 1.0, %v3882_v33 }
 0xdf1   :  { %v1935_v13 = vadd.f32 1.0, %v3884_v34 }
 0xdf2   :  { %3889 = vrcp.f32 %v1936_v22 }
 0xdf3   :  { %3891 = vrcp.f32 %v1935_v13 }
 0xdf4   :  { %v3886_v25 = vpop.eup %3885 }
 0xdf5   :  { %v3888_v31 = vpop.eup %3887  ;;  %v1938_v35 = vadd.f32 1.0, %v3886_v25 }
 0xdf6   :  { %v1937_v36 = vadd.f32 1.0, %v3888_v31 }
 0xdf7   :  { %3893 = vrcp.f32 %v1938_v35 }
 0xdf8   :  { %3895 = vrcp.f32 %v1937_v36 }
 0xdfc   :  { %v3890_v32 = vpop.eup %3889 }
 0xdfd   :  { %v3892_v42 = vpop.eup %3891  ;;  %v1996_v28 = vsub.f32 1.0, %v3890_v32  ;;  %v2020_v6 = vmul.f32 %v3890_v32, %v4600_v44 }
 0xdfe   :  { %v1995_v5 = vsub.f32 1.0, %v3892_v42 }
 0xe01   :  { %v3894_v38 = vpop.eup %3893 }
 0xe02   :  { %v3896_v40 = vpop.eup %3895  ;;  %v2022_v14 = vmul.f32 %v3894_v38, %v4610_v55 }
 0xe03   :  { %v1997_v9 = vsub.f32 1.0, %v3896_v40  ;;  %v2021_v44 = vmul.f32 %v3896_v40, %v4612_v56 }
 0xe55   :  { %v1958_v41 = vpop.permute.xlu0 %1957 }
 0xe56   :  { %v1968_v29 = vmul.f32 %v3890_v32, %v1958_v41  ;;  %v1956_v30 = vpop.permute.xlu1 %1955 }
 0xe57   :  { %v1967_v37 = vmul.f32 %v3892_v42, %v1956_v30 }
 0xe58   :  { %1977 = vrot.lane.b32.xlu0 %v1968_v29, %s4104_s16 }
 0xe59   :  { %1975 = vrot.lane.b32.xlu1 %v1967_v37, %s4104_s16 }
 0xe5a   :  { %v1962_v39 = vpop.permute.xlu0 %1961 }
 0xe5b   :  { %v1970_v43 = vmul.f32 %v3894_v38, %v1962_v39  ;;  %v1960_v47 = vpop.permute.xlu1 %1959 }
 0xe5c   :  { %v1969_v48 = vmul.f32 %v3896_v40, %v1960_v47 }
 0xe5d   :  { %1981 = vrot.lane.b32.xlu0 %v1970_v43, %s4104_s16 }
 0xe5e   :  { %1979 = vrot.lane.b32.xlu1 %v1969_v48, %s4104_s16 }
 0xeca   :  { %v1978_v50 = vpop.permute.xlu0 %1977 }
 0xecb   :  { %v1988_v51 = vadd.f32 %v1978_v50, %v1801_v18  ;;  %v1976_v53 = vpop.permute.xlu1 %1975  ;;  %v2019_v18 = vmul.f32 %v3892_v42, %v4602_v46 }
 0xecc   :  { %v1987_v54 = vadd.f32 %v1976_v53, %v1796_v26 }
 0xecd   :  { %3897 = vtanh.f32 %v1988_v51 }
 0xece   :  { %3899 = vtanh.f32 %v1987_v54 }
 0xecf   :  { %v1982_v62 = vpop.permute.xlu0 %1981 }
 0xed0   :  { %v1990_v63 = vadd.f32 %v1982_v62, %v1811_v3  ;;  %v1980_v57 = vpop.permute.xlu1 %1979  ;;  %v1998_v3 = vsub.f32 1.0, %v3894_v38 }
 0xed1   :  { %v1989_v11 = vadd.f32 %v1980_v57, %v1806_v60 }
 0xed2   :  { %3901 = vtanh.f32 %v1990_v63 }
 0xed3   :  { %3903 = vtanh.f32 %v1989_v11 }
 0xed7   :  { %v3898_v12 = vpop.eup %3897 }
 0xed8   :  { %v3900_v58 = vpop.eup %3899  ;;  %2005 = vrot.lane.b32.xlu0 %v3898_v12, %s4105_s15 }
 0xed9   :  { %2003 = vrot.lane.b32.xlu1 %v3900_v58, %s4105_s15 }
 0xedc   :  { %v3902_v61 = vpop.eup %3901 }
 0xedd   :  { %v3904_v0 = vpop.eup %3903  ;;  %2009 = vrot.lane.b32.xlu0 %v3902_v61, %s4105_s15 }
 0xede   :  { %2007 = vrot.lane.b32.xlu1 %v3904_v0, %s4105_s15 }
 0xf4a   :  { %v2006_v1 = vpop.permute.xlu0 %2005 }
 0xf4b   :  { %v2016_v7 = vmul.f32 %v2006_v1, %v1996_v28  ;;  %v2004_v10 = vpop.permute.xlu1 %2003 }
 0xf4c   :  { %v2015_v26 = vmul.f32 %v2004_v10, %v1995_v5 }
 0xf4d   :  { %v4657_v27 = vadd.f32 %v2020_v6, %v2016_v7 }
 0xf4e   :  { %v4659_v15 = vadd.f32 %v2019_v18, %v2015_v26 }
 0xf4f   :  { %v2010_v60 = vpop.permute.xlu0 %2009  ;;  %2134 = vrot.lane.b32.xlu0 %v4657_v27, %s4105_s15 }
 0xf50   :  { %v2018_v20 = vmul.f32 %v2010_v60, %v1998_v3  ;;  %v2008_v2 = vpop.permute.xlu1 %2007  ;;  %2132 = vrot.lane.b32.xlu1 %v4659_v15, %s4105_s15 }
 0xf51   :  { %v2017_v46 = vmul.f32 %v2008_v2, %v1997_v9 }
 0xf52   :  { %v4667_v8 = vadd.f32 %v2022_v14, %v2018_v20 }
 0xf53   :  { %v4669_v24 = vadd.f32 %v2021_v44, %v2017_v46 }
 0xf54   :  { %2138 = vrot.lane.b32.xlu0 %v4667_v8, %s4105_s15 }
 0xf55   :  { %2136 = vrot.lane.b32.xlu1 %v4669_v24, %s4105_s15 }
 0xf58   :  { %2029 = vrot.lane.b32.xlu0 %v4551_v21, %s4105_s15 }
 0xf59   :  { %2027 = vrot.lane.b32.xlu1 %v4543_v16, %s4105_s15 }
 0xf5c   :  { %2033 = vrot.lane.b32.xlu0 %v4563_v59, %s4105_s15 }
 0xf5d   :  { %2031 = vrot.lane.b32.xlu1 %v4555_v23, %s4105_s15 }
 0xfc1   :  { %v2135_v55 = vpop.permute.xlu0 %2134 }
 0xfc2   :  { %v2133_v56 = vpop.permute.xlu1 %2132 }
 0xfc3   :  { %3528 = vmatprep.mubr.msk.f32.mxu0 %vm114_vm0, %v2133_v56 }
 0xfc4   :  { %3529 = vmatmul.mubr.msk.f32.vlgmr.msra.gmra.mrb[32].mxu0 %vm114_vm0, %v2135_v55 }
 0xfc5   :  { %3735 = vmatpush3.bf16.msra.mxu0 %v4306_v52 }
 0xfc6   :  { %v2139_v33 = vpop.permute.xlu0 %2138  ;;  %3737 = vmatprep.subr.bf16.mxu0 %v4323_v4 }
 0xfc7   :  { %v2137_v34 = vpop.permute.xlu1 %2136 }
 0xfc8   :  { %3531 = vmatprep.mubr.msk.f32.mxu0 %vm114_vm0, %v2137_v34 }
 0xfc9   :  { %3532 = vmatmul.mubr.msk.f32.gmra.mrb[34].mxu0 %vm114_vm0, %v2139_v33 }
 0xfca   :  { %v2030_v22 = vpop.permute.xlu0 %2029  ;;  %3739 = vmatpush3.bf16.msra.mxu0 %v4323_v4 }
 0xfcb   :  { %v2028_v13 = vpop.permute.xlu1 %2027  ;;  %3749 = vmatprep.subr.bf16.mxu0 %v4306_v52 }
 0xfcc   :  { %3514 = vmatprep.mubr.msk.f32.mxu1 %vm114_vm0, %v2028_v13 }
 0xfcd   :  { %3515 = vmatmul.mubr.msk.f32.vlgmr.msra.gmra.mrb[20].mxu1 %vm114_vm0, %v2030_v22 }
 0xfce   :  { %3727 = vmatpush3.bf16.msra.mxu1 %v4293_v45  ;;  %v2034_v31 = vpop.permute.xlu0 %2033 }
 0xfcf   :  { %v2032_v25 = vpop.permute.xlu1 %2031  ;;  %3729 = vmatprep.subr.bf16.mxu1 %v4299_v49 }
 0xfd0   :  { %3517 = vmatprep.mubr.msk.f32.mxu1 %vm114_vm0, %v2032_v25 }
 0xfd1   :  { %3518 = vmatmul.mubr.msk.f32.gmra.mrb[22].mxu1 %vm114_vm0, %v2034_v31 }
 0xfd2   :  { %3731 = vmatpush3.bf16.msra.mxu1 %v4299_v49 }
 0xfd3   :  { %3741 = vmatprep.subr.bf16.mxu1 %v4293_v45 }
0x1097   :  { %v3530_v35 = vpop.f32.mrb[32].mxu0 }
0x1098   :  { %v2262_v36 = vadd.f32 %v3530_v35, %v4351_v19  ;;  %v2214_v32 = vpop.f32.mrb[33].mxu0 }
0x1099   :  { %v2261_v41 = vadd.f32 %v2214_v32, %v4351_v19 }
0x109a   :  { %2271 = vrot.lane.b32.xlu0 %v2262_v36, %s4104_s16 }
0x109b   :  { %2269 = vrot.lane.b32.xlu1 %v2261_v41, %s4104_s16 }
0x109c   :  { %v3533_v42 = vpop.f32.mrb[34].mxu0 }
0x109d   :  { %v2264_v29 = vadd.f32 %v3533_v42, %v4351_v19  ;;  %v2224_v30 = vpop.f32.mrb[35].mxu0 }
0x109e   :  { %v2263_v37 = vadd.f32 %v2224_v30, %v4351_v19 }
0x109f   :  { %2275 = vrot.lane.b32.xlu0 %v2264_v29, %s4104_s16 }
0x10a0   :  { %2273 = vrot.lane.b32.xlu1 %v2263_v37, %s4104_s16  ;;  %v3516_v38 = vpop.f32.mrb[20].mxu1 }
0x10a1   :  { %v2109_v39 = vpop.f32.mrb[21].mxu1  ;;  %v2115_v47 = vadd.f32 %v4637_v17, %v3516_v38 }
0x10a2   :  { %v2110_v48 = vadd.f32 %v4637_v17, %v2109_v39 }
0x10a3   :  { %v2234_v50 = vadd.f32 %v3530_v35, %v2115_v47 }
0x10a4   :  { %v3519_v40 = vpop.f32.mrb[22].mxu1  ;;  %v2233_v51 = vadd.f32 %v2214_v32, %v2110_v48 }
0x10a5   :  { %v2119_v43 = vpop.f32.mrb[23].mxu1  ;;  %v2125_v53 = vadd.f32 %v4637_v17, %v3519_v40  ;;  %v3176_v62 = vmul.f32 -1.442695, %v2234_v50 }
0x10a6   :  { %v2120_v54 = vadd.f32 %v4637_v17, %v2119_v43  ;;  %v3175_v63 = vmul.f32 -1.442695, %v2233_v51 }
0x10a7   :  { %v2236_v57 = vadd.f32 %v3533_v42, %v2125_v53  ;;  %3905 = vpow2.f32 %v3176_v62 }
0x10a8   :  { %v2235_v11 = vadd.f32 %v2224_v30, %v2120_v54  ;;  %3907 = vpow2.f32 %v3175_v63 }
0x10a9   :  { %v3178_v12 = vmul.f32 -1.442695, %v2236_v57 }
0x10aa   :  { %v3177_v58 = vmul.f32 -1.442695, %v2235_v11 }
0x10ab   :  { %3909 = vpow2.f32 %v3178_v12 }
0x10ac   :  { %3911 = vpow2.f32 %v3177_v58 }
0x10b1   :  { %v3906_v61 = vpop.eup %3905 }
0x10b2   :  { %v3908_v0 = vpop.eup %3907  ;;  %v2250_v28 = vadd.f32 1.0, %v3906_v61 }
0x10b3   :  { %v2249_v1 = vadd.f32 1.0, %v3908_v0 }
0x10b4   :  { %3913 = vrcp.f32 %v2250_v28 }
0x10b5   :  { %v3910_v5 = vpop.eup %3909  ;;  %3915 = vrcp.f32 %v2249_v1 }
0x10b6   :  { %v3912_v6 = vpop.eup %3911  ;;  %v2252_v7 = vadd.f32 1.0, %v3910_v5 }
0x10b7   :  { %v2251_v10 = vadd.f32 1.0, %v3912_v6 }
0x10b8   :  { %3917 = vrcp.f32 %v2252_v7 }
0x10b9   :  { %3919 = vrcp.f32 %v2251_v10 }
0x10be   :  { %v3914_v18 = vpop.eup %3913 }
0x10bf   :  { %v3916_v3 = vpop.eup %3915  ;;  %v2310_v30 = vsub.f32 1.0, %v3914_v18  ;;  %v2334_v39 = vmul.f32 %v3914_v18, %v4657_v27 }
0x10c0   :  { %v2309_v38 = vsub.f32 1.0, %v3916_v3 }
0x10c2   :  { %v3918_v20 = vpop.eup %3917 }
0x10c3   :  { %v3920_v44 = vpop.eup %3919  ;;  %v2336_v63 = vmul.f32 %v3918_v20, %v4667_v8 }
0x10c4   :  { %v2311_v62 = vsub.f32 1.0, %v3920_v44  ;;  %v2335_v27 = vmul.f32 %v3920_v44, %v4669_v24 }
0x110c   :  { %v2272_v26 = vpop.permute.xlu0 %2271 }
0x110d   :  { %v2282_v60 = vmul.f32 %v3914_v18, %v2272_v26  ;;  %v2270_v9 = vpop.permute.xlu1 %2269 }
0x110e   :  { %v2281_v14 = vmul.f32 %v3916_v3, %v2270_v9 }
0x110f   :  { %2291 = vrot.lane.b32.xlu0 %v2282_v60, %s4104_s16 }
0x1110   :  { %2289 = vrot.lane.b32.xlu1 %v2281_v14, %s4104_s16 }
0x1111   :  { %v2276_v2 = vpop.permute.xlu0 %2275 }
0x1112   :  { %v2284_v46 = vmul.f32 %v3918_v20, %v2276_v2  ;;  %v2274_v55 = vpop.permute.xlu1 %2273 }
0x1113   :  { %v2283_v56 = vmul.f32 %v3920_v44, %v2274_v55 }
0x1114   :  { %2295 = vrot.lane.b32.xlu0 %v2284_v46, %s4104_s16 }
0x1115   :  { %2293 = vrot.lane.b32.xlu1 %v2283_v56, %s4104_s16 }
0x1181   :  { %v2292_v33 = vpop.permute.xlu0 %2291 }
0x1182   :  { %v2302_v34 = vadd.f32 %v2292_v33, %v2115_v47  ;;  %v2290_v22 = vpop.permute.xlu1 %2289  ;;  %v2333_v47 = vmul.f32 %v3916_v3, %v4659_v15 }
0x1183   :  { %v2301_v13 = vadd.f32 %v2290_v22, %v2110_v48 }
0x1184   :  { %3921 = vtanh.f32 %v2302_v34 }
0x1185   :  { %3923 = vtanh.f32 %v2301_v13 }
0x1186   :  { %v2296_v25 = vpop.permute.xlu0 %2295 }
0x1187   :  { %v2304_v31 = vadd.f32 %v2296_v25, %v2125_v53  ;;  %v2294_v35 = vpop.permute.xlu1 %2293  ;;  %v2312_v53 = vsub.f32 1.0, %v3918_v20 }
0x1188   :  { %v2303_v36 = vadd.f32 %v2294_v35, %v2120_v54 }
0x1189   :  { %3925 = vtanh.f32 %v2304_v31 }
0x118a   :  { %3927 = vtanh.f32 %v2303_v36 }
0x118e   :  { %v3922_v32 = vpop.eup %3921 }
0x118f   :  { %v3924_v41 = vpop.eup %3923  ;;  %2319 = vrot.lane.b32.xlu0 %v3922_v32, %s4105_s15 }
0x1190   :  { %2317 = vrot.lane.b32.xlu1 %v3924_v41, %s4105_s15 }
0x1193   :  { %v3926_v42 = vpop.eup %3925 }
0x1194   :  { %v3928_v29 = vpop.eup %3927  ;;  %2323 = vrot.lane.b32.xlu0 %v3926_v42, %s4105_s15 }
0x1195   :  { %2321 = vrot.lane.b32.xlu1 %v3928_v29, %s4105_s15 }
0x1201   :  { %v2320_v37 = vpop.permute.xlu0 %2319 }
0x1202   :  { %v2330_v40 = vmul.f32 %v2320_v37, %v2310_v30  ;;  %v2318_v43 = vpop.permute.xlu1 %2317 }
0x1203   :  { %v2329_v48 = vmul.f32 %v2318_v43, %v2309_v38 }
0x1204   :  { %v4721_v50 = vadd.f32 %v2334_v39, %v2330_v40 }
0x1205   :  { %v4723_v51 = vadd.f32 %v2333_v47, %v2329_v48 }
0x1206   :  { %v2324_v54 = vpop.permute.xlu0 %2323  ;;  %2448 = vrot.lane.b32.xlu0 %v4721_v50, %s4105_s15 }
0x1207   :  { %v2332_v57 = vmul.f32 %v2324_v54, %v2312_v53  ;;  %v2322_v11 = vpop.permute.xlu1 %2321  ;;  %2446 = vrot.lane.b32.xlu1 %v4723_v51, %s4105_s15 }
0x1208   :  { %v2331_v15 = vmul.f32 %v2322_v11, %v2311_v62 }
0x1209   :  { %v4731_v12 = vadd.f32 %v2336_v63, %v2332_v57 }
0x120a   :  { %v4733_v58 = vadd.f32 %v2335_v27, %v2331_v15 }
0x120b   :  { %2452 = vrot.lane.b32.xlu0 %v4731_v12, %s4105_s15 }
0x120c   :  { %2450 = vrot.lane.b32.xlu1 %v4733_v58, %s4105_s15 }
0x120f   :  { %2343 = vrot.lane.b32.xlu0 %v4551_v21, %s4104_s16 }
0x1210   :  { %2341 = vrot.lane.b32.xlu1 %v4543_v16, %s4104_s16 }
0x1213   :  { %2347 = vrot.lane.b32.xlu0 %v4563_v59, %s4104_s16 }
0x1214   :  { %2345 = vrot.lane.b32.xlu1 %v4555_v23, %s4104_s16 }
0x1278   :  { %v2449_v8 = vpop.permute.xlu0 %2448 }
0x1279   :  { %v2447_v24 = vpop.permute.xlu1 %2446 }
0x127a   :  { %3556 = vmatprep.mubr.msk.f32.mxu0 %vm114_vm0, %v2447_v24 }
0x127b   :  { %3557 = vmatmul.mubr.msk.f32.vlgmr.msra.gmra.mrb[36].mxu0 %vm114_vm0, %v2449_v8 }
0x127c   :  { %3751 = vmatpush3.bf16.msra.mxu0 %v4306_v52 }
0x127d   :  { %v2453_v61 = vpop.permute.xlu0 %2452  ;;  %3753 = vmatprep.subr.bf16.mxu0 %v4323_v4 }
0x127e   :  { %v2451_v0 = vpop.permute.xlu1 %2450 }
0x127f   :  { %3559 = vmatprep.mubr.msk.f32.mxu0 %vm114_vm0, %v2451_v0 }
0x1280   :  { %3560 = vmatmul.mubr.msk.f32.gmra.mrb[38].mxu0 %vm114_vm0, %v2453_v61 }
0x1281   :  { %v2344_v28 = vpop.permute.xlu0 %2343  ;;  %3755 = vmatpush3.bf16.msra.mxu0 %v4323_v4 }
0x1282   :  { %v2342_v1 = vpop.permute.xlu1 %2341 }
0x1283   :  { %3542 = vmatprep.mubr.msk.f32.mxu1 %vm114_vm0, %v2342_v1 }
0x1284   :  { %3543 = vmatmul.mubr.msk.f32.vlgmr.msra.gmra.mrb[24].mxu1 %vm114_vm0, %v2344_v28 }
0x1285   :  { %3743 = vmatpush3.bf16.msra.mxu1 %v4293_v45  ;;  %v2348_v52 = vpop.permute.xlu0 %2347 }
0x1286   :  { %v2346_v5 = vpop.permute.xlu1 %2345  ;;  %3745 = vmatprep.subr.bf16.mxu1 %v4299_v49 }
0x1287   :  { %3545 = vmatprep.mubr.msk.f32.mxu1 %vm114_vm0, %v2346_v5 }
0x1288   :  { %3546 = vmatmul.mubr.msk.f32.gmra.mrb[26].mxu1 %vm114_vm0, %v2348_v52 }
0x1289   :  { %3747 = vmatpush3.bf16.msra.mxu1 %v4299_v49 }
0x134e   :  { %v3558_v6 = vpop.f32.mrb[36].mxu0 }
0x134f   :  { %v2576_v4 = vadd.f32 %v3558_v6, %v4351_v19  ;;  %v2528_v7 = vpop.f32.mrb[37].mxu0 }
0x1350   :  { %v2575_v10 = vadd.f32 %v2528_v7, %v4351_v19 }
0x1351   :  { %2585 = vrot.lane.b32.xlu0 %v2576_v4, %s4104_s16 }
0x1352   :  { %2583 = vrot.lane.b32.xlu1 %v2575_v10, %s4104_s16 }
0x1353   :  { %v3561_v45 = vpop.f32.mrb[38].mxu0 }
0x1354   :  { %v2578_v18 = vadd.f32 %v3561_v45, %v4351_v19  ;;  %v2538_v26 = vpop.f32.mrb[39].mxu0 }
0x1355   :  { %v2577_v3 = vadd.f32 %v2538_v26, %v4351_v19 }
0x1356   :  { %2589 = vrot.lane.b32.xlu0 %v2578_v18, %s4104_s16 }
0x1357   :  { %2587 = vrot.lane.b32.xlu1 %v2577_v3, %s4104_s16  ;;  %v3544_v49 = vpop.f32.mrb[24].mxu1 }
0x1358   :  { %v2423_v60 = vpop.f32.mrb[25].mxu1  ;;  %v2429_v20 = vadd.f32 %v4637_v17, %v3544_v49 }
0x1359   :  { %v2424_v2 = vadd.f32 %v4637_v17, %v2423_v60 }
0x135a   :  { %v2548_v44 = vadd.f32 %v3558_v6, %v2429_v20 }
0x135b   :  { %v3547_v9 = vpop.f32.mrb[26].mxu1  ;;  %v2547_v46 = vadd.f32 %v2528_v7, %v2424_v2 }
0x135c   :  { %v2433_v14 = vpop.f32.mrb[27].mxu1  ;;  %v2439_v55 = vadd.f32 %v4637_v17, %v3547_v9  ;;  %v3188_v33 = vmul.f32 -1.442695, %v2548_v44 }
0x135d   :  { %v2434_v56 = vadd.f32 %v4637_v17, %v2433_v14  ;;  %v3187_v34 = vmul.f32 -1.442695, %v2547_v46 }
0x135e   :  { %v2550_v22 = vadd.f32 %v3561_v45, %v2439_v55  ;;  %3929 = vpow2.f32 %v3188_v33 }
0x135f   :  { %v2549_v13 = vadd.f32 %v2538_v26, %v2434_v56  ;;  %3931 = vpow2.f32 %v3187_v34 }
0x1360   :  { %v3190_v25 = vmul.f32 -1.442695, %v2550_v22 }
0x1361   :  { %v3189_v31 = vmul.f32 -1.442695, %v2549_v13 }
0x1362   :  { %3933 = vpow2.f32 %v3190_v25 }
0x1363   :  { %3935 = vpow2.f32 %v3189_v31 }
0x1368   :  { %v3930_v35 = vpop.eup %3929 }
0x1369   :  { %v3932_v36 = vpop.eup %3931  ;;  %v2564_v32 = vadd.f32 1.0, %v3930_v35 }
0x136a   :  { %v2563_v41 = vadd.f32 1.0, %v3932_v36 }
0x136b   :  { %3937 = vrcp.f32 %v2564_v32 }
0x136c   :  { %v3934_v42 = vpop.eup %3933  ;;  %3939 = vrcp.f32 %v2563_v41 }
0x136d   :  { %v3936_v29 = vpop.eup %3935  ;;  %v2566_v30 = vadd.f32 1.0, %v3934_v42 }
0x136e   :  { %v2565_v37 = vadd.f32 1.0, %v3936_v29 }
0x136f   :  { %3941 = vrcp.f32 %v2566_v30 }
0x1370   :  { %3943 = vrcp.f32 %v2565_v37 }
0x1375   :  { %v3938_v38 = vpop.eup %3937 }
0x1376   :  { %v3940_v40 = vpop.eup %3939  ;;  %v2624_v7 = vsub.f32 1.0, %v3938_v38  ;;  %v2648_v18 = vmul.f32 %v3938_v38, %v4721_v50 }
0x1377   :  { %v2623_v45 = vsub.f32 1.0, %v3940_v40  ;;  %v2647_v49 = vmul.f32 %v3940_v40, %v4723_v51 }
0x1379   :  { %v3942_v53 = vpop.eup %3941 }
0x137a   :  { %v3944_v62 = vpop.eup %3943  ;;  %v2650_v46 = vmul.f32 %v3942_v53, %v4731_v12 }
0x137b   :  { %v2625_v44 = vsub.f32 1.0, %v3944_v62  ;;  %v2649_v50 = vmul.f32 %v3944_v62, %v4733_v58 }
0x13c3   :  { %v2586_v39 = vpop.permute.xlu0 %2585 }
0x13c4   :  { %v2596_v43 = vmul.f32 %v3938_v38, %v2586_v39  ;;  %v2584_v47 = vpop.permute.xlu1 %2583 }
0x13c5   :  { %v2595_v48 = vmul.f32 %v3940_v40, %v2584_v47 }
0x13c6   :  { %2605 = vrot.lane.b32.xlu0 %v2596_v43, %s4104_s16 }
0x13c7   :  { %2603 = vrot.lane.b32.xlu1 %v2595_v48, %s4104_s16 }
0x13c8   :  { %v2590_v54 = vpop.permute.xlu0 %2589 }
0x13c9   :  { %v2598_v63 = vmul.f32 %v3942_v53, %v2590_v54  ;;  %v2588_v57 = vpop.permute.xlu1 %2587 }
0x13ca   :  { %v2597_v11 = vmul.f32 %v3944_v62, %v2588_v57 }
0x13cb   :  { %2609 = vrot.lane.b32.xlu0 %v2598_v63, %s4104_s16 }
0x13cc   :  { %2607 = vrot.lane.b32.xlu1 %v2597_v11, %s4104_s16 }
0x1438   :  { %v2606_v27 = vpop.permute.xlu0 %2605 }
0x1439   :  { %v2616_v15 = vadd.f32 %v2606_v27, %v2429_v20  ;;  %v2604_v8 = vpop.permute.xlu1 %2603  ;;  %v2626_v20 = vsub.f32 1.0, %v3942_v53 }
0x143a   :  { %v2615_v24 = vadd.f32 %v2604_v8, %v2424_v2 }
0x143b   :  { %3945 = vtanh.f32 %v2616_v15 }
0x143c   :  { %3947 = vtanh.f32 %v2615_v24 }
0x143d   :  { %v2610_v61 = vpop.permute.xlu0 %2609 }
0x143e   :  { %v2618_v0 = vadd.f32 %v2610_v61, %v2439_v55  ;;  %v2608_v28 = vpop.permute.xlu1 %2607 }
0x143f   :  { %v2617_v1 = vadd.f32 %v2608_v28, %v2434_v56 }
0x1440   :  { %3949 = vtanh.f32 %v2618_v0 }
0x1441   :  { %3951 = vtanh.f32 %v2617_v1 }
0x1445   :  { %v3946_v5 = vpop.eup %3945 }
0x1446   :  { %v3948_v52 = vpop.eup %3947  ;;  %2633 = vrot.lane.b32.xlu0 %v3946_v5, %s4105_s15 }
0x1447   :  { %2631 = vrot.lane.b32.xlu1 %v3948_v52, %s4105_s15 }
0x144a   :  { %v3950_v6 = vpop.eup %3949 }
0x144b   :  { %v3952_v4 = vpop.eup %3951  ;;  %2637 = vrot.lane.b32.xlu0 %v3950_v6, %s4105_s15 }
0x144c   :  { %2635 = vrot.lane.b32.xlu1 %v3952_v4, %s4105_s15 }
0x14b8   :  { %v2634_v10 = vpop.permute.xlu0 %2633 }
0x14b9   :  { %v2644_v26 = vmul.f32 %v2634_v10, %v2624_v7  ;;  %v2632_v3 = vpop.permute.xlu1 %2631 }
0x14ba   :  { %v2643_v60 = vmul.f32 %v2632_v3, %v2623_v45 }
0x14bb   :  { %v4783_v9 = vadd.f32 %v2648_v18, %v2644_v26 }
0x14bc   :  { %v4785_v14 = vadd.f32 %v2647_v49, %v2643_v60 }
0x14bd   :  { %v2638_v2 = vpop.permute.xlu0 %2637  ;;  %2762 = vrot.lane.b32.xlu0 %v4783_v9, %s4105_s15 }
0x14be   :  { %v2646_v55 = vmul.f32 %v2638_v2, %v2626_v20  ;;  %v2636_v56 = vpop.permute.xlu1 %2635  ;;  %2760 = vrot.lane.b32.xlu1 %v4785_v14, %s4105_s15 }
0x14bf   :  { %v2645_v51 = vmul.f32 %v2636_v56, %v2625_v44 }
0x14c0   :  { %v4793_v33 = vadd.f32 %v2650_v46, %v2646_v55 }
0x14c1   :  { %v4795_v34 = vadd.f32 %v2649_v50, %v2645_v51 }
0x14c2   :  { %2766 = vrot.lane.b32.xlu0 %v4793_v33, %s4105_s15 }
0x14c3   :  { %2764 = vrot.lane.b32.xlu1 %v4795_v34, %s4105_s15 }
0x14c6   :  { %2657 = vrot.lane.b32.xlu0 %v4551_v21, %s4106_s17 }
0x14c7   :  { %2655 = vrot.lane.b32.xlu1 %v4543_v16, %s4106_s17 }
0x14ca   :  { %2661 = vrot.lane.b32.xlu0 %v4563_v59, %s4106_s17 }
0x14cb   :  { %2659 = vrot.lane.b32.xlu1 %v4555_v23, %s4106_s17 }
0x152f   :  { %v2763_v12 = vpop.permute.xlu0 %2762 }
0x1530   :  { %v2761_v58 = vpop.permute.xlu1 %2760 }
0x1531   :  { %3584 = vmatprep.mubr.msk.f32.mxu0 %vm114_vm0, %v2761_v58  ;;  %v2970_v58 = vld [vmem:[%s4885_s9 + $0x8] sm:$0xff] }
0x1532   :  { %3585 = vmatmul.mubr.msk.f32.vlgmr.msra.gmra.mrb[40].mxu0 %vm114_vm0, %v2763_v12  ;;  %v2969_v12 = vld [vmem:[%s4885_s9] sm:$0xff] }
0x1534   :  { %v2767_v22 = vpop.permute.xlu0 %2766 }
0x1535   :  { %v2765_v13 = vpop.permute.xlu1 %2764 }
0x1536   :  { %3587 = vmatprep.mubr.msk.f32.mxu0 %vm114_vm0, %v2765_v13  ;;  %v3756_v13 = vpack.c.bf16 %v2970_v58, %v2969_v12 }
0x1537   :  { %3588 = vmatmul.mubr.msk.f32.gmra.mrb[42].mxu0 %vm114_vm0, %v2767_v22  ;;  %v2971_v22 = vld [vmem:[%s4885_s9 + $0x10] sm:$0xff] }
0x1538   :  { %v2658_v21 = vpop.permute.xlu0 %2657  ;;  %3757 = vmatprep.subr.bf16.mxu1 %v3756_v13 }
0x1539   :  { %v2656_v16 = vpop.permute.xlu1 %2655 }
0x153a   :  { %3570 = vmatprep.mubr.msk.f32.mxu1 %vm114_vm0, %v2656_v16 }
0x153b   :  { %3571 = vmatmul.mubr.msk.f32.vlgmr.msra.gmra.mrb[28].mxu1 %vm114_vm0, %v2658_v21  ;;  %v2972_v21 = vld [vmem:[%s4885_s9 + $0x18] sm:$0xff] }
0x153c   :  { %v2662_v23 = vpop.permute.xlu0 %2661  ;;  %3759 = vmatpush3.bf16.msra.mxu1 %v3756_v13 }
0x153d   :  { %v2660_v59 = vpop.permute.xlu1 %2659 }
0x153e   :  { %3573 = vmatprep.mubr.msk.f32.mxu1 %vm114_vm0, %v2660_v59  ;;  %v3760_v59 = vpack.c.bf16 %v2972_v21, %v2971_v22 }
0x153f   :  { %3574 = vmatmul.mubr.msk.f32.gmra.mrb[30].mxu1 %vm114_vm0, %v2662_v23 }
0x1540   :  { %3761 = vmatprep.subr.bf16.mxu1 %v3760_v59 }
0x1541   :  { %3763 = vmatpush3.bf16.msra.mxu1 %v3760_v59 }
0x1605   :  { %v3586_v25 = vpop.f32.mrb[40].mxu0 }
0x1606   :  { %v2890_v31 = vadd.f32 %v3586_v25, %v4351_v19  ;;  %v2842_v35 = vpop.f32.mrb[41].mxu0 }
0x1607   :  { %v2889_v36 = vadd.f32 %v2842_v35, %v4351_v19 }
0x1608   :  { %2899 = vrot.lane.b32.xlu0 %v2890_v31, %s4104_s16 }
0x1609   :  { %2897 = vrot.lane.b32.xlu1 %v2889_v36, %s4104_s16 }
0x160a   :  { %v3589_v32 = vpop.f32.mrb[42].mxu0 }
0x160b   :  { %v2892_v41 = vadd.f32 %v3589_v32, %v4351_v19  ;;  %v2852_v42 = vpop.f32.mrb[43].mxu0 }
0x160c   :  { %v2891_v29 = vadd.f32 %v2852_v42, %v4351_v19 }
0x160d   :  { %2903 = vrot.lane.b32.xlu0 %v2892_v41, %s4104_s16 }
0x160e   :  { %2901 = vrot.lane.b32.xlu1 %v2891_v29, %s4104_s16  ;;  %v3572_v30 = vpop.f32.mrb[28].mxu1 }
0x160f   :  { %v2737_v37 = vpop.f32.mrb[29].mxu1  ;;  %v2743_v40 = vadd.f32 %v4637_v17, %v3572_v30 }
0x1610   :  { %v2738_v43 = vadd.f32 %v4637_v17, %v2737_v37 }
0x1611   :  { %v2862_v47 = vadd.f32 %v3586_v25, %v2743_v40 }
0x1612   :  { %v3575_v38 = vpop.f32.mrb[30].mxu1  ;;  %v2861_v48 = vadd.f32 %v2842_v35, %v2738_v43 }
0x1613   :  { %v2747_v39 = vpop.f32.mrb[31].mxu1  ;;  %v2753_v53 = vadd.f32 %v4637_v17, %v3575_v38  ;;  %v3200_v62 = vmul.f32 -1.442695, %v2862_v47 }
0x1614   :  { %v2748_v54 = vadd.f32 %v4637_v17, %v2747_v39  ;;  %v3199_v19 = vmul.f32 -1.442695, %v2861_v48 }
0x1615   :  { %v2864_v63 = vadd.f32 %v3589_v32, %v2753_v53  ;;  %3953 = vpow2.f32 %v3200_v62 }
0x1616   :  { %v2863_v57 = vadd.f32 %v2852_v42, %v2748_v54  ;;  %3955 = vpow2.f32 %v3199_v19 }
0x1617   :  { %v3202_v11 = vmul.f32 -1.442695, %v2864_v63 }
0x1618   :  { %v3201_v27 = vmul.f32 -1.442695, %v2863_v57 }
0x1619   :  { %3957 = vpow2.f32 %v3202_v11 }
0x161a   :  { %3959 = vpow2.f32 %v3201_v27 }
0x161f   :  { %v3954_v15 = vpop.eup %3953 }
0x1620   :  { %v3956_v8 = vpop.eup %3955  ;;  %v2878_v24 = vadd.f32 1.0, %v3954_v15 }
0x1621   :  { %v2877_v61 = vadd.f32 1.0, %v3956_v8 }
0x1622   :  { %3961 = vrcp.f32 %v2878_v24 }
0x1623   :  { %v3958_v0 = vpop.eup %3957  ;;  %3963 = vrcp.f32 %v2877_v61 }
0x1624   :  { %v3960_v28 = vpop.eup %3959  ;;  %v2880_v1 = vadd.f32 1.0, %v3958_v0 }
0x1625   :  { %v2879_v17 = vadd.f32 1.0, %v3960_v28 }
0x1626   :  { %3965 = vrcp.f32 %v2880_v1 }
0x1627   :  { %3967 = vrcp.f32 %v2879_v17 }
0x162c   :  { %v3962_v5 = vpop.eup %3961 }
0x162d   :  { %v3964_v6 = vpop.eup %3963  ;;  %v2938_v35 = vsub.f32 1.0, %v3962_v5  ;;  %v2962_v41 = vmul.f32 %v3962_v5, %v4783_v9 }
0x162e   :  { %v2937_v32 = vsub.f32 1.0, %v3964_v6  ;;  %v2961_v30 = vmul.f32 %v3964_v6, %v4785_v14 }
0x1630   :  { %v3966_v45 = vpop.eup %3965 }
0x1631   :  { %v3968_v26 = vpop.eup %3967  ;;  %v2964_v48 = vmul.f32 %v3966_v45, %v4793_v33 }
0x1632   :  { %v2939_v47 = vsub.f32 1.0, %v3968_v26  ;;  %v2963_v9 = vmul.f32 %v3968_v26, %v4795_v34  ;;  %v3203_v34 = vld [vmem:[%s4886_s10] ss:$0 sm:$0xff] }
0x167a   :  { %v2900_v52 = vpop.permute.xlu0 %2899 }
0x167b   :  { %v2910_v4 = vmul.f32 %v3962_v5, %v2900_v52  ;;  %v2898_v7 = vpop.permute.xlu1 %2897 }
0x167c   :  { %v2909_v10 = vmul.f32 %v3964_v6, %v2898_v7 }
0x167d   :  { %2919 = vrot.lane.b32.xlu0 %v2910_v4, %s4104_s16 }
0x167e   :  { %2917 = vrot.lane.b32.xlu1 %v2909_v10, %s4104_s16 }
0x167f   :  { %v2904_v18 = vpop.permute.xlu0 %2903 }
0x1680   :  { %v2912_v3 = vmul.f32 %v3966_v45, %v2904_v18  ;;  %v2902_v49 = vpop.permute.xlu1 %2901 }
0x1681   :  { %v2911_v60 = vmul.f32 %v3968_v26, %v2902_v49 }
0x1682   :  { %2923 = vrot.lane.b32.xlu0 %v2912_v3, %s4104_s16 }
0x1683   :  { %2921 = vrot.lane.b32.xlu1 %v2911_v60, %s4104_s16 }
0x16ef   :  { %v2920_v20 = vpop.permute.xlu0 %2919 }
0x16f0   :  { %v2930_v2 = vadd.f32 %v2920_v20, %v2743_v40  ;;  %v2918_v44 = vpop.permute.xlu1 %2917  ;;  %v2940_v40 = vsub.f32 1.0, %v3966_v45 }
0x16f1   :  { %v2929_v46 = vadd.f32 %v2918_v44, %v2738_v43 }
0x16f2   :  { %3969 = vtanh.f32 %v2930_v2 }
0x16f3   :  { %3971 = vtanh.f32 %v2929_v46 }
0x16f4   :  { %v2924_v55 = vpop.permute.xlu0 %2923 }
0x16f5   :  { %v2932_v56 = vadd.f32 %v2924_v55, %v2753_v53  ;;  %v2922_v50 = vpop.permute.xlu1 %2921 }
0x16f6   :  { %v2931_v51 = vadd.f32 %v2922_v50, %v2748_v54 }
0x16f7   :  { %3973 = vtanh.f32 %v2932_v56 }
0x16f8   :  { %3975 = vtanh.f32 %v2931_v51 }
0x16fc   :  { %v3970_v16 = vpop.eup %3969 }
0x16fd   :  { %v3972_v23 = vpop.eup %3971  ;;  %2947 = vrot.lane.b32.xlu0 %v3970_v16, %s4105_s15 }
0x16fe   :  { %2945 = vrot.lane.b32.xlu1 %v3972_v23, %s4105_s15 }
0x1701   :  { %v3974_v25 = vpop.eup %3973 }
0x1702   :  { %v3976_v31 = vpop.eup %3975  ;;  %2951 = vrot.lane.b32.xlu0 %v3974_v25, %s4105_s15 }
0x1703   :  { %2949 = vrot.lane.b32.xlu1 %v3976_v31, %s4105_s15 }
0x176f   :  { %v2948_v36 = vpop.permute.xlu0 %2947 }
0x1770   :  { %v2958_v42 = vmul.f32 %v2948_v36, %v2938_v35  ;;  %v2946_v29 = vpop.permute.xlu1 %2945 }
0x1771   :  { %v2957_v37 = vmul.f32 %v2946_v29, %v2937_v32 }
0x1772   :  { %v2966_v38 = vadd.f32 %v2962_v41, %v2958_v42 }
0x1773   :  { %v2965_v39 = vadd.f32 %v2961_v30, %v2957_v37 }
0x1774   :  { %v2952_v43 = vpop.permute.xlu0 %2951  ;;  %2986 = vrot.lane.b32.xlu0 %v2966_v38, %s4105_s15 }
0x1775   :  { %v2960_v53 = vmul.f32 %v2952_v43, %v2940_v40  ;;  %v2950_v54 = vpop.permute.xlu1 %2949  ;;  %2984 = vrot.lane.b32.xlu1 %v2965_v39, %s4105_s15 }
0x1776   :  { %v2959_v62 = vmul.f32 %v2950_v54, %v2939_v47 }
0x1777   :  { %v2968_v19 = vadd.f32 %v2964_v48, %v2960_v53 }
0x1778   :  { %v2967_v63 = vadd.f32 %v2963_v9, %v2959_v62 }
0x1779   :  { %2990 = vrot.lane.b32.xlu0 %v2968_v19, %s4105_s15 }
0x177a   :  { %2988 = vrot.lane.b32.xlu1 %v2967_v63, %s4105_s15 }
0x17e6   :  { %v2987_v14 = vpop.permute.xlu0 %2986 }
0x17e7   :  { %v2985_v57 = vpop.permute.xlu1 %2984 }
0x17e8   :  { %3598 = vmatprep.mubr.msk.f32.mxu1 %vm114_vm0, %v2985_v57 }
0x17e9   :  { %3599 = vmatmul.mubr.msk.f32.vlgmr.msra.gmra.mrb[32].mxu1 %vm114_vm0, %v2987_v14 }
0x17eb   :  { %v2991_v11 = vpop.permute.xlu0 %2990 }
0x17ec   :  { %v2989_v33 = vpop.permute.xlu1 %2988 }
0x17ed   :  { %3601 = vmatprep.mubr.msk.f32.mxu1 %vm114_vm0, %v2989_v33 }
0x17ee   :  { %3602 = vmatmul.mubr.msk.f32.gmra.mrb[34].mxu1 %vm114_vm0, %v2991_v11 }
0x18bc   :  { %v3600_v27 = vpop.f32.mrb[32].mxu1 }
0x18bd   :  { %v3072_v15 = vadd.f32 %v3600_v27, %v3203_v34  ;;  %v3066_v8 = vpop.f32.mrb[33].mxu1 }
0x18be   :  { %v3067_v24 = vadd.f32 %v3203_v34, %v3066_v8 }
0x18bf   :  { %3087 = vst.msk [vmem:[%s4887_s11 + $0x8] sm:$0xff] %vm3085_vm1, %v3072_v15 }
0x18c0   :  { %3086 = vst.msk [vmem:[%s4887_s11] sm:$0xff] %vm3085_vm1, %v3067_v24 }
0x18c1   :  { %v3603_v61 = vpop.f32.mrb[34].mxu1 }
0x18c2   :  { %v3082_v0 = vadd.f32 %v3603_v61, %v3203_v34  ;;  %v3076_v28 = vpop.f32.mrb[35].mxu1 }
0x18c3   :  { %v3077_v1 = vadd.f32 %v3203_v34, %v3076_v28 }
0x18c4   :  { %3089 = vst.msk [vmem:[%s4887_s11 + $0x18] sm:$0xff] %vm3085_vm1, %v3082_v0 }
0x18c5   :  { %3088 = vst.msk [vmem:[%s4887_s11 + $0x10] sm:$0xff] %vm3085_vm1, %v3077_v1 }
0x18c6   :  { %3094 = vsyncpa [#allocation3], 1 }
0x18c7   :  { %3095 = vsyncpa [#allocation5], 1 }
0x18c8   :  { %3096 = vsyncpa [#allocation8], 1 }

</bundles_post_ra>
